<compile_context>
chip_gen: v5e
topology: v5e:2x2
jax: 0.10.0
libtpu: 0.0.40
codegen_flags: <defaults>
</compile_context>

<pallas_src>
import jax
import jax.numpy as jnp
from jax import lax
from jax.experimental import pallas as pl
from jax.experimental.pallas import tpu as pltpu


# ----------------------------------------------------------------------------
# Pallas kernel: fused bidirectional LSTM recurrence over the full sequence.
# Refs:
#   gx_ref  : (T, B, 8H)  precomputed x@W_ih + bias, gate columns pair-interleaved
#                         [i_f i_b | f_f f_b | g_f g_b | o_f o_b] (each block H wide)
#   whh_ref : (2H, 8H)    block-diagonal hidden->gate weights
#                         rows 0:H  (h_fwd) -> fwd gate columns,
#                         rows H:2H (h_bwd) -> bwd gate columns, zeros elsewhere
#   out_ref : (T, B, 2H)  output; [:, :, 0:H] = fwd hidden, [:, :, H:2H] = bwd hidden
# Scratch:
#   h_scr, c_scr : (B, 2H)  [fwd | bwd] recurrent state kept in VMEM.
# ----------------------------------------------------------------------------
def _bilstm_kernel(gx_ref, whh_ref, out_ref, h_scr, c_scr):
    T = gx_ref.shape[0]
    B = gx_ref.shape[1]
    G = gx_ref.shape[2]          # 8H
    H2 = whh_ref.shape[0]        # 2H
    H = H2 // 2

    h_scr[...] = jnp.zeros_like(h_scr)
    c_scr[...] = jnp.zeros_like(c_scr)

    # Hoisted out of the time loop: weight values + direction-select lane mask.
    whh = whh_ref[...]                                             # (2H, 8H)
    lane = lax.broadcasted_iota(jnp.int32, (B, G), dimension=1)
    fwd_mask = (lane % H2) < H                                     # fwd gate lanes

    T1 = T - 1

    def step(s, carry):
        # Gate inputs: fwd direction consumes time s, bwd direction time T-1-s.
        gx_f = gx_ref[s]                                           # (B, 8H)
        gx_b = gx_ref[T1 - s]                                      # (B, 8H)
        gates_x = jnp.where(fwd_mask, gx_f, gx_b)

        # Single 256-wide recurrent matmul for both directions.
        gates = gates_x + jnp.dot(h_scr[...], whh,
                                  preferred_element_type=jnp.float32)  # (B, 8H)

        # Two full-width transcendental passes, then full-width (B, 2H) updates.
        sig = jax.nn.sigmoid(gates)
        th = jnp.tanh(gates)
        i_all = sig[:, 0 * H2:1 * H2]
        f_all = sig[:, 1 * H2:2 * H2]
        g_all = th[:, 2 * H2:3 * H2]
        o_all = sig[:, 3 * H2:4 * H2]

        c_new = f_all * c_scr[...] + i_all * g_all                 # (B, 2H)
        h_new = o_all * jnp.tanh(c_new)                            # (B, 2H)
        c_scr[...] = c_new
        h_scr[...] = h_new

        # fwd hidden for time s; bwd hidden for time T-1-s.
        out_ref[s, :, 0:H] = h_new[:, 0:H]
        out_ref[T1 - s, :, H:H2] = h_new[:, H:H2]
        return carry

    lax.fori_loop(0, T, step, 0, unroll=True)


# ----------------------------------------------------------------------------
# Weight packing glue (PyTorch layout -> fused pair-interleaved layout).
# ----------------------------------------------------------------------------
def _pack_bidir_weights(p, H):
    def gate_blocks_t(w):                    # (4H, K) -> (K, 4, H)
        return jnp.transpose(w).reshape(-1, 4, H)

    # Input->gate weights for both directions, pair-interleaved columns.
    wih_f = gate_blocks_t(p["w_ih_fwd"])     # (D, 4, H)
    wih_b = gate_blocks_t(p["w_ih_bwd"])     # (D, 4, H)
    D = wih_f.shape[0]
    wih_big = jnp.stack([wih_f, wih_b], axis=2).reshape(D, 8 * H)

    # Hidden->gate weights: block-diagonal (fwd rows -> fwd cols, bwd -> bwd).
    whh_f = gate_blocks_t(p["w_hh_fwd"])     # (H, 4, H)
    whh_b = gate_blocks_t(p["w_hh_bwd"])     # (H, 4, H)
    z = jnp.zeros_like(whh_f)
    top = jnp.stack([whh_f, z], axis=2)      # (H, 4, 2, H)
    bot = jnp.stack([z, whh_b], axis=2)      # (H, 4, 2, H)
    whh_big = jnp.concatenate([top, bot], axis=0).reshape(2 * H, 8 * H)

    # Combined biases, pair-interleaved.
    b_f = (p["b_ih_fwd"] + p["b_hh_fwd"]).reshape(4, H)
    b_b = (p["b_ih_bwd"] + p["b_hh_bwd"]).reshape(4, H)
    b_big = jnp.stack([b_f, b_b], axis=1).reshape(8 * H)

    return (wih_big.astype(jnp.float32),
            whh_big.astype(jnp.float32),
            b_big.astype(jnp.float32))


def _bilstm_layer(x_tm, p):
    """One fused bidirectional layer. x_tm: (T, B, D) time-major -> (T, B, 2H)."""
    T, B, D = x_tm.shape
    H = p["w_hh_fwd"].shape[1]
    wih_big, whh_big, b_big = _pack_bidir_weights(p, H)

    # Input projection for BOTH directions as one big matmul, hoisted out of the
    # serial recurrence (done as XLA glue; could equally be fused into the
    # previous layer's output).
    gx = jnp.dot(x_tm.reshape(T * B, D).astype(jnp.float32), wih_big,
                 precision=lax.Precision.HIGHEST) + b_big
    gx = gx.reshape(T, B, 8 * H)

    return pl.pallas_call(
        _bilstm_kernel,
        out_shape=jax.ShapeDtypeStruct((T, B, 2 * H), jnp.float32),
        grid=(1,),
        in_specs=[
            pl.BlockSpec((T, B, 8 * H), lambda i: (0, 0, 0)),
            pl.BlockSpec((2 * H, 8 * H), lambda i: (0, 0)),
        ],
        out_specs=pl.BlockSpec((T, B, 2 * H), lambda i: (0, 0, 0)),
        scratch_shapes=[
            pltpu.VMEM((B, 2 * H), jnp.float32),   # h state [fwd | bwd]
            pltpu.VMEM((B, 2 * H), jnp.float32),   # c state [fwd | bwd]
        ],
        compiler_params=pltpu.CompilerParams(
            dimension_semantics=("arbitrary",)),
    )(gx, whh_big)


def lstm_block_forward(x, params):
    """Matches nn.LSTM(batch_first=True, bidirectional=True) forward output.

    x: (B, T, C_in) float32.
    params: list of per-layer dicts with keys
      w_ih_fwd, w_hh_fwd, b_ih_fwd, b_hh_fwd, w_ih_bwd, w_hh_bwd, b_ih_bwd, b_hh_bwd
    Returns (B, T, 2 * hidden).
    """
    # Transpose ONCE to time-major; stay time-major between layers.
    x_tm = jnp.transpose(x, (1, 0, 2))           # (T, B, C)
    for p in params:
        x_tm = _bilstm_layer(x_tm, p)            # (T, B, 2H)
    return jnp.transpose(x_tm, (1, 0, 2))        # (B, T, 2H)


# ----------------------------------------------------------------------------
# Deterministic parameter construction (PyTorch-style uniform(-1/sqrt(H), 1/sqrt(H))).
# ----------------------------------------------------------------------------
def make_params(key, in_channels, hidden, num_layers):
    params = []
    bound = 1.0 / jnp.sqrt(float(hidden))
    for layer in range(num_layers):
        d_in = in_channels if layer == 0 else 2 * hidden
        p = {}
        for direction in ("fwd", "bwd"):
            key, k1, k2, k3, k4 = jax.random.split(key, 5)
            p[f"w_ih_{direction}"] = jax.random.uniform(
                k1, (4 * hidden, d_in), jnp.float32, -bound, bound)
            p[f"w_hh_{direction}"] = jax.random.uniform(
                k2, (4 * hidden, hidden), jnp.float32, -bound, bound)
            p[f"b_ih_{direction}"] = jax.random.uniform(
                k3, (4 * hidden,), jnp.float32, -bound, bound)
            p[f"b_hh_{direction}"] = jax.random.uniform(
                k4, (4 * hidden,), jnp.float32, -bound, bound)
        params.append(p)
    return params


# ----------------------------------------------------------------------------
# Pure-JAX reference (lax.scan, per-direction) for correctness checking.
# ----------------------------------------------------------------------------
def _ref_direction(x_tm, w_ih, w_hh, b_ih, b_hh):
    T, B, D = x_tm.shape
    H = w_hh.shape[1]
    b = b_ih + b_hh

    def step(carry, x_t):
        h, c = carry
        gates = x_t @ w_ih.T + h @ w_hh.T + b
        i_g = jax.nn.sigmoid(gates[:, 0 * H:1 * H])
        f_g = jax.nn.sigmoid(gates[:, 1 * H:2 * H])
        g_g = jnp.tanh(gates[:, 2 * H:3 * H])
        o_g = jax.nn.sigmoid(gates[:, 3 * H:4 * H])
        c_new = f_g * c + i_g * g_g
        h_new = o_g * jnp.tanh(c_new)
        return (h_new, c_new), h_new

    init = (jnp.zeros((B, H), jnp.float32), jnp.zeros((B, H), jnp.float32))
    _, hs = lax.scan(step, init, x_tm)
    return hs


def lstm_block_reference(x, params):
    layer_in = x
    for p in params:
        x_tm = jnp.transpose(layer_in, (1, 0, 2))
        out_f = _ref_direction(
            x_tm, p["w_ih_fwd"], p["w_hh_fwd"], p["b_ih_fwd"], p["b_hh_fwd"])
        out_b = jnp.flip(
            _ref_direction(jnp.flip(x_tm, axis=0),
                           p["w_ih_bwd"], p["w_hh_bwd"], p["b_ih_bwd"], p["b_hh_bwd"]),
            axis=0)
        layer_in = jnp.transpose(jnp.concatenate([out_f, out_b], axis=-1), (1, 0, 2))
    return layer_in


if __name__ == "__main__":
    # Small shapes consistent with LSTMBlock(in_channels=4, out_channels=32).
    B, T, C_IN, HIDDEN, NUM_LAYERS = 2, 8, 4, 32, 1

    key = jax.random.PRNGKey(0)
    key, kx, kp = jax.random.split(key, 3)
    x = jax.random.normal(kx, (B, T, C_IN), jnp.float32)
    params = make_params(kp, C_IN, HIDDEN, NUM_LAYERS)

    out = jax.block_until_ready(lstm_block_forward(x, params))
    assert out.shape == (B, T, 2 * HIDDEN), out.shape

    ref = jax.block_until_ready(lstm_block_reference(x, params))
    assert jnp.allclose(out, ref, rtol=1e-4, atol=1e-4), (
        float(jnp.max(jnp.abs(out - ref))))

    print("KERNEL_OK")
</pallas_src>

<mosaic_0001>
module attributes {stable_mosaic.version = 11 : i64} {
  func.func @_bilstm_kernel(%arg0: i32, %arg1: memref<8x2x256xf32, #tpu.memory_space<vmem>>, %arg2: memref<64x256xf32, #tpu.memory_space<vmem>>, %arg3: memref<8x2x64xf32, #tpu.memory_space<vmem>>, %arg4: memref<2x64xf32, #tpu.memory_space<vmem>>, %arg5: memref<2x64xf32, #tpu.memory_space<vmem>>) attributes {dimension_semantics = [#tpu.dimension_semantics<arbitrary>], iteration_bounds = array<i64: 1>, scalar_prefetch = 0 : i64, scratch_operands = 2 : i64, tpu.core_type = #tpu.core_type<tc>, window_params = [{pipeline_mode = #tpu.pipeline_mode<synchronous>, transform_indices = @transform_0, window_bounds = array<i64: 8, 2, 256>}, {pipeline_mode = #tpu.pipeline_mode<synchronous>, transform_indices = @transform_1, window_bounds = array<i64: 64, 256>}, {pipeline_mode = #tpu.pipeline_mode<synchronous>, transform_indices = @transform_2, window_bounds = array<i64: 8, 2, 64>}]} {
    %cst = arith.constant 0.000000e+00 : f32
    %0 = vector.broadcast %cst : f32 to vector<2x64xf32>
    %c0 = arith.constant 0 : index
    %c0_0 = arith.constant 0 : index
    %1 = vector.load %arg4[%c0, %c0_0] : memref<2x64xf32, #tpu.memory_space<vmem>>, vector<2x64xf32>
    tpu.vector_store %arg4[%c0, %c0_0], %0 {strides = array<i32>} : memref<2x64xf32, #tpu.memory_space<vmem>>, vector<2x64xf32>,
    %cst_1 = arith.constant 0.000000e+00 : f32
    %2 = vector.broadcast %cst_1 : f32 to vector<2x64xf32>
    %c0_2 = arith.constant 0 : index
    %c0_3 = arith.constant 0 : index
    %3 = vector.load %arg5[%c0_2, %c0_3] : memref<2x64xf32, #tpu.memory_space<vmem>>, vector<2x64xf32>
    tpu.vector_store %arg5[%c0_2, %c0_3], %2 {strides = array<i32>} : memref<2x64xf32, #tpu.memory_space<vmem>>, vector<2x64xf32>,
    %c0_4 = arith.constant 0 : index
    %c0_5 = arith.constant 0 : index
    %4 = vector.load %arg2[%c0_4, %c0_5] : memref<64x256xf32, #tpu.memory_space<vmem>>, vector<64x256xf32>
    %5 = tpu.iota {dimensions = array<i32: 1>} : vector<2x256xi32>
    %c64_i32 = arith.constant 64 : i32
    %c0_i32 = arith.constant 0 : i32
    %6 = arith.cmpi eq, %c64_i32, %c0_i32 : i32
    %c1_i32 = arith.constant 1 : i32
    %7 = arith.select %6, %c1_i32, %c64_i32 : i32
    %8 = vector.broadcast %7 : i32 to vector<2x256xi32>
    %9 = arith.remsi %5, %8 : vector<2x256xi32>
    %c0_i32_6 = arith.constant 0 : i32
    %10 = vector.broadcast %c0_i32_6 : i32 to vector<2x256xi32>
    %11 = arith.cmpi ne, %9, %10 : vector<2x256xi32>
    %c0_i32_7 = arith.constant 0 : i32
    %12 = vector.broadcast %c0_i32_7 : i32 to vector<2x256xi32>
    %13 = arith.cmpi slt, %9, %12 : vector<2x256xi32>
    %c0_i32_8 = arith.constant 0 : i32
    %14 = arith.cmpi slt, %7, %c0_i32_8 : i32
    %15 = vector.broadcast %14 : i1 to vector<2x256xi1>
    %16 = vector.broadcast %15 : vector<2x256xi1> to vector<2x256xi1>
    %17 = arith.xori %13, %16 : vector<2x256xi1>
    %18 = arith.andi %17, %11 : vector<2x256xi1>
    %19 = vector.broadcast %7 : i32 to vector<2x256xi32>
    %20 = arith.addi %9, %19 : vector<2x256xi32>
    %21 = arith.select %18, %20, %9 : vector<2x256xi1>, vector<2x256xi32>
    %c32_i32 = arith.constant 32 : i32
    %22 = vector.broadcast %c32_i32 : i32 to vector<2x256xi32>
    %23 = arith.cmpi slt, %21, %22 : vector<2x256xi32>
    %c0_i32_9 = arith.constant 0 : i32
    %24 = arith.index_cast %c0_i32_9 : i32 to index
    %c0_10 = arith.constant 0 : index
    %c0_11 = arith.constant 0 : index
    %25 = vector.load %arg1[%24, %c0_10, %c0_11] : memref<8x2x256xf32, #tpu.memory_space<vmem>>, vector<1x2x256xf32>
    %26 = vector.shape_cast %25 : vector<1x2x256xf32> to vector<2x256xf32>
    %c7_i32 = arith.constant 7 : i32
    %27 = arith.subi %c7_i32, %c0_i32_9 : i32
    %28 = arith.index_cast %27 : i32 to index
    %c0_12 = arith.constant 0 : index
    %c0_13 = arith.constant 0 : index
    %29 = vector.load %arg1[%28, %c0_12, %c0_13] : memref<8x2x256xf32, #tpu.memory_space<vmem>>, vector<1x2x256xf32>
    %30 = vector.shape_cast %29 : vector<1x2x256xf32> to vector<2x256xf32>
    %31 = arith.select %23, %26, %30 : vector<2x256xi1>, vector<2x256xf32>
    %c0_14 = arith.constant 0 : index
    %c0_15 = arith.constant 0 : index
    %32 = vector.load %arg4[%c0_14, %c0_15] : memref<2x64xf32, #tpu.memory_space<vmem>>, vector<2x64xf32>
    %cst_16 = arith.constant dense<0.000000e+00> : vector<2x256xf32>
    %33 = tpu.matmul %32, %4, %cst_16 {dimension_numbers = #tpu.dot_dimension_numbers<[1], [0], [0], [1], [0, 0, 1, 1], [], []>} : vector<2x64xf32>, vector<64x256xf32>, vector<2x256xf32> -> vector<2x256xf32>
    %34 = arith.addf %31, %33 : vector<2x256xf32>
    %35 = arith.negf %34 : vector<2x256xf32>
    %36 = math.exp %35 : vector<2x256xf32>
    %cst_17 = arith.constant 1.000000e+00 : f32
    %37 = vector.broadcast %cst_17 : f32 to vector<2x256xf32>
    %38 = arith.addf %37, %36 : vector<2x256xf32>
    %39 = arith.divf %37, %38 : vector<2x256xf32>
    %40 = math.tanh %34 : vector<2x256xf32>
    %41 = vector.extract_strided_slice %39 {offsets = [0, 0], sizes = [2, 64], strides = [1, 1]} : vector<2x256xf32> to vector<2x64xf32>
    %42 = vector.extract_strided_slice %39 {offsets = [0, 64], sizes = [2, 64], strides = [1, 1]} : vector<2x256xf32> to vector<2x64xf32>
    %43 = vector.extract_strided_slice %40 {offsets = [0, 128], sizes = [2, 64], strides = [1, 1]} : vector<2x256xf32> to vector<2x64xf32>
    %44 = vector.extract_strided_slice %39 {offsets = [0, 192], sizes = [2, 64], strides = [1, 1]} : vector<2x256xf32> to vector<2x64xf32>
    %c0_18 = arith.constant 0 : index
    %c0_19 = arith.constant 0 : index
    %45 = vector.load %arg5[%c0_18, %c0_19] : memref<2x64xf32, #tpu.memory_space<vmem>>, vector<2x64xf32>
    %46 = arith.mulf %42, %45 : vector<2x64xf32>
    %47 = arith.mulf %41, %43 : vector<2x64xf32>
    %48 = arith.addf %46, %47 : vector<2x64xf32>
    %49 = math.tanh %48 : vector<2x64xf32>
    %50 = arith.mulf %44, %49 : vector<2x64xf32>
    %c0_20 = arith.constant 0 : index
    %c0_21 = arith.constant 0 : index
    %51 = vector.load %arg5[%c0_20, %c0_21] : memref<2x64xf32, #tpu.memory_space<vmem>>, vector<2x64xf32>
    tpu.vector_store %arg5[%c0_20, %c0_21], %48 {strides = array<i32>} : memref<2x64xf32, #tpu.memory_space<vmem>>, vector<2x64xf32>,
    %c0_22 = arith.constant 0 : index
    %c0_23 = arith.constant 0 : index
    %52 = vector.load %arg4[%c0_22, %c0_23] : memref<2x64xf32, #tpu.memory_space<vmem>>, vector<2x64xf32>
    tpu.vector_store %arg4[%c0_22, %c0_23], %50 {strides = array<i32>} : memref<2x64xf32, #tpu.memory_space<vmem>>, vector<2x64xf32>,
    %53 = vector.extract_strided_slice %50 {offsets = [0, 0], sizes = [2, 32], strides = [1, 1]} : vector<2x64xf32> to vector<2x32xf32>
    %54 = arith.index_cast %c0_i32_9 : i32 to index
    %c0_24 = arith.constant 0 : index
    %c0_25 = arith.constant 0 : index
    %55 = vector.load %arg3[%54, %c0_24, %c0_25] : memref<8x2x64xf32, #tpu.memory_space<vmem>>, vector<1x2x32xf32>
    %56 = vector.shape_cast %55 : vector<1x2x32xf32> to vector<2x32xf32>
    %57 = vector.shape_cast %53 : vector<2x32xf32> to vector<1x2x32xf32>
    tpu.vector_store %arg3[%54, %c0_24, %c0_25], %57 {strides = array<i32>} : memref<8x2x64xf32, #tpu.memory_space<vmem>>, vector<1x2x32xf32>,
    %58 = vector.extract_strided_slice %50 {offsets = [0, 32], sizes = [2, 32], strides = [1, 1]} : vector<2x64xf32> to vector<2x32xf32>
    %c7_i32_26 = arith.constant 7 : i32
    %59 = arith.subi %c7_i32_26, %c0_i32_9 : i32
    %60 = arith.index_cast %59 : i32 to index
    %c0_27 = arith.constant 0 : index
    %c32 = arith.constant 32 : index
    %61 = vector.load %arg3[%60, %c0_27, %c32] : memref<8x2x64xf32, #tpu.memory_space<vmem>>, vector<1x2x32xf32>
    %62 = vector.shape_cast %61 : vector<1x2x32xf32> to vector<2x32xf32>
    %63 = vector.shape_cast %58 : vector<2x32xf32> to vector<1x2x32xf32>
    tpu.vector_store %arg3[%60, %c0_27, %c32], %63 {strides = array<i32>} : memref<8x2x64xf32, #tpu.memory_space<vmem>>, vector<1x2x32xf32>,
    %c1_i32_28 = arith.constant 1 : i32
    %64 = arith.index_cast %c1_i32_28 : i32 to index
    %c0_29 = arith.constant 0 : index
    %c0_30 = arith.constant 0 : index
    %65 = vector.load %arg1[%64, %c0_29, %c0_30] : memref<8x2x256xf32, #tpu.memory_space<vmem>>, vector<1x2x256xf32>
    %66 = vector.shape_cast %65 : vector<1x2x256xf32> to vector<2x256xf32>
    %c7_i32_31 = arith.constant 7 : i32
    %67 = arith.subi %c7_i32_31, %c1_i32_28 : i32
    %68 = arith.index_cast %67 : i32 to index
    %c0_32 = arith.constant 0 : index
    %c0_33 = arith.constant 0 : index
    %69 = vector.load %arg1[%68, %c0_32, %c0_33] : memref<8x2x256xf32, #tpu.memory_space<vmem>>, vector<1x2x256xf32>
    %70 = vector.shape_cast %69 : vector<1x2x256xf32> to vector<2x256xf32>
    %71 = arith.select %23, %66, %70 : vector<2x256xi1>, vector<2x256xf32>
    %c0_34 = arith.constant 0 : index
    %c0_35 = arith.constant 0 : index
    %72 = vector.load %arg4[%c0_34, %c0_35] : memref<2x64xf32, #tpu.memory_space<vmem>>, vector<2x64xf32>
    %cst_36 = arith.constant dense<0.000000e+00> : vector<2x256xf32>
    %73 = tpu.matmul %72, %4, %cst_36 {dimension_numbers = #tpu.dot_dimension_numbers<[1], [0], [0], [1], [0, 0, 1, 1], [], []>} : vector<2x64xf32>, vector<64x256xf32>, vector<2x256xf32> -> vector<2x256xf32>
    %74 = arith.addf %71, %73 : vector<2x256xf32>
    %75 = arith.negf %74 : vector<2x256xf32>
    %76 = math.exp %75 : vector<2x256xf32>
    %cst_37 = arith.constant 1.000000e+00 : f32
    %77 = vector.broadcast %cst_37 : f32 to vector<2x256xf32>
    %78 = arith.addf %77, %76 : vector<2x256xf32>
    %79 = arith.divf %77, %78 : vector<2x256xf32>
    %80 = math.tanh %74 : vector<2x256xf32>
    %81 = vector.extract_strided_slice %79 {offsets = [0, 0], sizes = [2, 64], strides = [1, 1]} : vector<2x256xf32> to vector<2x64xf32>
    %82 = vector.extract_strided_slice %79 {offsets = [0, 64], sizes = [2, 64], strides = [1, 1]} : vector<2x256xf32> to vector<2x64xf32>
    %83 = vector.extract_strided_slice %80 {offsets = [0, 128], sizes = [2, 64], strides = [1, 1]} : vector<2x256xf32> to vector<2x64xf32>
    %84 = vector.extract_strided_slice %79 {offsets = [0, 192], sizes = [2, 64], strides = [1, 1]} : vector<2x256xf32> to vector<2x64xf32>
    %c0_38 = arith.constant 0 : index
    %c0_39 = arith.constant 0 : index
    %85 = vector.load %arg5[%c0_38, %c0_39] : memref<2x64xf32, #tpu.memory_space<vmem>>, vector<2x64xf32>
    %86 = arith.mulf %82, %85 : vector<2x64xf32>
    %87 = arith.mulf %81, %83 : vector<2x64xf32>
    %88 = arith.addf %86, %87 : vector<2x64xf32>
    %89 = math.tanh %88 : vector<2x64xf32>
    %90 = arith.mulf %84, %89 : vector<2x64xf32>
    %c0_40 = arith.constant 0 : index
    %c0_41 = arith.constant 0 : index
    %91 = vector.load %arg5[%c0_40, %c0_41] : memref<2x64xf32, #tpu.memory_space<vmem>>, vector<2x64xf32>
    tpu.vector_store %arg5[%c0_40, %c0_41], %88 {strides = array<i32>} : memref<2x64xf32, #tpu.memory_space<vmem>>, vector<2x64xf32>,
    %c0_42 = arith.constant 0 : index
    %c0_43 = arith.constant 0 : index
    %92 = vector.load %arg4[%c0_42, %c0_43] : memref<2x64xf32, #tpu.memory_space<vmem>>, vector<2x64xf32>
    tpu.vector_store %arg4[%c0_42, %c0_43], %90 {strides = array<i32>} : memref<2x64xf32, #tpu.memory_space<vmem>>, vector<2x64xf32>,
    %93 = vector.extract_strided_slice %90 {offsets = [0, 0], sizes = [2, 32], strides = [1, 1]} : vector<2x64xf32> to vector<2x32xf32>
    %94 = arith.index_cast %c1_i32_28 : i32 to index
    %c0_44 = arith.constant 0 : index
    %c0_45 = arith.constant 0 : index
    %95 = vector.load %arg3[%94, %c0_44, %c0_45] : memref<8x2x64xf32, #tpu.memory_space<vmem>>, vector<1x2x32xf32>
    %96 = vector.shape_cast %95 : vector<1x2x32xf32> to vector<2x32xf32>
    %97 = vector.shape_cast %93 : vector<2x32xf32> to vector<1x2x32xf32>
    tpu.vector_store %arg3[%94, %c0_44, %c0_45], %97 {strides = array<i32>} : memref<8x2x64xf32, #tpu.memory_space<vmem>>, vector<1x2x32xf32>,
    %98 = vector.extract_strided_slice %90 {offsets = [0, 32], sizes = [2, 32], strides = [1, 1]} : vector<2x64xf32> to vector<2x32xf32>
    %c7_i32_46 = arith.constant 7 : i32
    %99 = arith.subi %c7_i32_46, %c1_i32_28 : i32
    %100 = arith.index_cast %99 : i32 to index
    %c0_47 = arith.constant 0 : index
    %c32_48 = arith.constant 32 : index
    %101 = vector.load %arg3[%100, %c0_47, %c32_48] : memref<8x2x64xf32, #tpu.memory_space<vmem>>, vector<1x2x32xf32>
    %102 = vector.shape_cast %101 : vector<1x2x32xf32> to vector<2x32xf32>
    %103 = vector.shape_cast %98 : vector<2x32xf32> to vector<1x2x32xf32>
    tpu.vector_store %arg3[%100, %c0_47, %c32_48], %103 {strides = array<i32>} : memref<8x2x64xf32, #tpu.memory_space<vmem>>, vector<1x2x32xf32>,
    %c2_i32 = arith.constant 2 : i32
    %104 = arith.index_cast %c2_i32 : i32 to index
    %c0_49 = arith.constant 0 : index
    %c0_50 = arith.constant 0 : index
    %105 = vector.load %arg1[%104, %c0_49, %c0_50] : memref<8x2x256xf32, #tpu.memory_space<vmem>>, vector<1x2x256xf32>
    %106 = vector.shape_cast %105 : vector<1x2x256xf32> to vector<2x256xf32>
    %c7_i32_51 = arith.constant 7 : i32
    %107 = arith.subi %c7_i32_51, %c2_i32 : i32
    %108 = arith.index_cast %107 : i32 to index
    %c0_52 = arith.constant 0 : index
    %c0_53 = arith.constant 0 : index
    %109 = vector.load %arg1[%108, %c0_52, %c0_53] : memref<8x2x256xf32, #tpu.memory_space<vmem>>, vector<1x2x256xf32>
    %110 = vector.shape_cast %109 : vector<1x2x256xf32> to vector<2x256xf32>
    %111 = arith.select %23, %106, %110 : vector<2x256xi1>, vector<2x256xf32>
    %c0_54 = arith.constant 0 : index
    %c0_55 = arith.constant 0 : index
    %112 = vector.load %arg4[%c0_54, %c0_55] : memref<2x64xf32, #tpu.memory_space<vmem>>, vector<2x64xf32>
    %cst_56 = arith.constant dense<0.000000e+00> : vector<2x256xf32>
    %113 = tpu.matmul %112, %4, %cst_56 {dimension_numbers = #tpu.dot_dimension_numbers<[1], [0], [0], [1], [0, 0, 1, 1], [], []>} : vector<2x64xf32>, vector<64x256xf32>, vector<2x256xf32> -> vector<2x256xf32>
    %114 = arith.addf %111, %113 : vector<2x256xf32>
    %115 = arith.negf %114 : vector<2x256xf32>
    %116 = math.exp %115 : vector<2x256xf32>
    %cst_57 = arith.constant 1.000000e+00 : f32
    %117 = vector.broadcast %cst_57 : f32 to vector<2x256xf32>
    %118 = arith.addf %117, %116 : vector<2x256xf32>
    %119 = arith.divf %117, %118 : vector<2x256xf32>
    %120 = math.tanh %114 : vector<2x256xf32>
    %121 = vector.extract_strided_slice %119 {offsets = [0, 0], sizes = [2, 64], strides = [1, 1]} : vector<2x256xf32> to vector<2x64xf32>
    %122 = vector.extract_strided_slice %119 {offsets = [0, 64], sizes = [2, 64], strides = [1, 1]} : vector<2x256xf32> to vector<2x64xf32>
    %123 = vector.extract_strided_slice %120 {offsets = [0, 128], sizes = [2, 64], strides = [1, 1]} : vector<2x256xf32> to vector<2x64xf32>
    %124 = vector.extract_strided_slice %119 {offsets = [0, 192], sizes = [2, 64], strides = [1, 1]} : vector<2x256xf32> to vector<2x64xf32>
    %c0_58 = arith.constant 0 : index
    %c0_59 = arith.constant 0 : index
    %125 = vector.load %arg5[%c0_58, %c0_59] : memref<2x64xf32, #tpu.memory_space<vmem>>, vector<2x64xf32>
    %126 = arith.mulf %122, %125 : vector<2x64xf32>
    %127 = arith.mulf %121, %123 : vector<2x64xf32>
    %128 = arith.addf %126, %127 : vector<2x64xf32>
    %129 = math.tanh %128 : vector<2x64xf32>
    %130 = arith.mulf %124, %129 : vector<2x64xf32>
    %c0_60 = arith.constant 0 : index
    %c0_61 = arith.constant 0 : index
    %131 = vector.load %arg5[%c0_60, %c0_61] : memref<2x64xf32, #tpu.memory_space<vmem>>, vector<2x64xf32>
    tpu.vector_store %arg5[%c0_60, %c0_61], %128 {strides = array<i32>} : memref<2x64xf32, #tpu.memory_space<vmem>>, vector<2x64xf32>,
    %c0_62 = arith.constant 0 : index
    %c0_63 = arith.constant 0 : index
    %132 = vector.load %arg4[%c0_62, %c0_63] : memref<2x64xf32, #tpu.memory_space<vmem>>, vector<2x64xf32>
    tpu.vector_store %arg4[%c0_62, %c0_63], %130 {strides = array<i32>} : memref<2x64xf32, #tpu.memory_space<vmem>>, vector<2x64xf32>,
    %133 = vector.extract_strided_slice %130 {offsets = [0, 0], sizes = [2, 32], strides = [1, 1]} : vector<2x64xf32> to vector<2x32xf32>
    %134 = arith.index_cast %c2_i32 : i32 to index
    %c0_64 = arith.constant 0 : index
    %c0_65 = arith.constant 0 : index
    %135 = vector.load %arg3[%134, %c0_64, %c0_65] : memref<8x2x64xf32, #tpu.memory_space<vmem>>, vector<1x2x32xf32>
    %136 = vector.shape_cast %135 : vector<1x2x32xf32> to vector<2x32xf32>
    %137 = vector.shape_cast %133 : vector<2x32xf32> to vector<1x2x32xf32>
    tpu.vector_store %arg3[%134, %c0_64, %c0_65], %137 {strides = array<i32>} : memref<8x2x64xf32, #tpu.memory_space<vmem>>, vector<1x2x32xf32>,
    %138 = vector.extract_strided_slice %130 {offsets = [0, 32], sizes = [2, 32], strides = [1, 1]} : vector<2x64xf32> to vector<2x32xf32>
    %c7_i32_66 = arith.constant 7 : i32
    %139 = arith.subi %c7_i32_66, %c2_i32 : i32
    %140 = arith.index_cast %139 : i32 to index
    %c0_67 = arith.constant 0 : index
    %c32_68 = arith.constant 32 : index
    %141 = vector.load %arg3[%140, %c0_67, %c32_68] : memref<8x2x64xf32, #tpu.memory_space<vmem>>, vector<1x2x32xf32>
    %142 = vector.shape_cast %141 : vector<1x2x32xf32> to vector<2x32xf32>
    %143 = vector.shape_cast %138 : vector<2x32xf32> to vector<1x2x32xf32>
    tpu.vector_store %arg3[%140, %c0_67, %c32_68], %143 {strides = array<i32>} : memref<8x2x64xf32, #tpu.memory_space<vmem>>, vector<1x2x32xf32>,
    %c3_i32 = arith.constant 3 : i32
    %144 = arith.index_cast %c3_i32 : i32 to index
    %c0_69 = arith.constant 0 : index
    %c0_70 = arith.constant 0 : index
    %145 = vector.load %arg1[%144, %c0_69, %c0_70] : memref<8x2x256xf32, #tpu.memory_space<vmem>>, vector<1x2x256xf32>
    %146 = vector.shape_cast %145 : vector<1x2x256xf32> to vector<2x256xf32>
    %c7_i32_71 = arith.constant 7 : i32
    %147 = arith.subi %c7_i32_71, %c3_i32 : i32
    %148 = arith.index_cast %147 : i32 to index
    %c0_72 = arith.constant 0 : index
    %c0_73 = arith.constant 0 : index
    %149 = vector.load %arg1[%148, %c0_72, %c0_73] : memref<8x2x256xf32, #tpu.memory_space<vmem>>, vector<1x2x256xf32>
    %150 = vector.shape_cast %149 : vector<1x2x256xf32> to vector<2x256xf32>
    %151 = arith.select %23, %146, %150 : vector<2x256xi1>, vector<2x256xf32>
    %c0_74 = arith.constant 0 : index
    %c0_75 = arith.constant 0 : index
    %152 = vector.load %arg4[%c0_74, %c0_75] : memref<2x64xf32, #tpu.memory_space<vmem>>, vector<2x64xf32>
    %cst_76 = arith.constant dense<0.000000e+00> : vector<2x256xf32>
    %153 = tpu.matmul %152, %4, %cst_76 {dimension_numbers = #tpu.dot_dimension_numbers<[1], [0], [0], [1], [0, 0, 1, 1], [], []>} : vector<2x64xf32>, vector<64x256xf32>, vector<2x256xf32> -> vector<2x256xf32>
    %154 = arith.addf %151, %153 : vector<2x256xf32>
    %155 = arith.negf %154 : vector<2x256xf32>
    %156 = math.exp %155 : vector<2x256xf32>
    %cst_77 = arith.constant 1.000000e+00 : f32
    %157 = vector.broadcast %cst_77 : f32 to vector<2x256xf32>
    %158 = arith.addf %157, %156 : vector<2x256xf32>
    %159 = arith.divf %157, %158 : vector<2x256xf32>
    %160 = math.tanh %154 : vector<2x256xf32>
    %161 = vector.extract_strided_slice %159 {offsets = [0, 0], sizes = [2, 64], strides = [1, 1]} : vector<2x256xf32> to vector<2x64xf32>
    %162 = vector.extract_strided_slice %159 {offsets = [0, 64], sizes = [2, 64], strides = [1, 1]} : vector<2x256xf32> to vector<2x64xf32>
    %163 = vector.extract_strided_slice %160 {offsets = [0, 128], sizes = [2, 64], strides = [1, 1]} : vector<2x256xf32> to vector<2x64xf32>
    %164 = vector.extract_strided_slice %159 {offsets = [0, 192], sizes = [2, 64], strides = [1, 1]} : vector<2x256xf32> to vector<2x64xf32>
    %c0_78 = arith.constant 0 : index
    %c0_79 = arith.constant 0 : index
    %165 = vector.load %arg5[%c0_78, %c0_79] : memref<2x64xf32, #tpu.memory_space<vmem>>, vector<2x64xf32>
    %166 = arith.mulf %162, %165 : vector<2x64xf32>
    %167 = arith.mulf %161, %163 : vector<2x64xf32>
    %168 = arith.addf %166, %167 : vector<2x64xf32>
    %169 = math.tanh %168 : vector<2x64xf32>
    %170 = arith.mulf %164, %169 : vector<2x64xf32>
    %c0_80 = arith.constant 0 : index
    %c0_81 = arith.constant 0 : index
    %171 = vector.load %arg5[%c0_80, %c0_81] : memref<2x64xf32, #tpu.memory_space<vmem>>, vector<2x64xf32>
    tpu.vector_store %arg5[%c0_80, %c0_81], %168 {strides = array<i32>} : memref<2x64xf32, #tpu.memory_space<vmem>>, vector<2x64xf32>,
    %c0_82 = arith.constant 0 : index
    %c0_83 = arith.constant 0 : index
    %172 = vector.load %arg4[%c0_82, %c0_83] : memref<2x64xf32, #tpu.memory_space<vmem>>, vector<2x64xf32>
    tpu.vector_store %arg4[%c0_82, %c0_83], %170 {strides = array<i32>} : memref<2x64xf32, #tpu.memory_space<vmem>>, vector<2x64xf32>,
    %173 = vector.extract_strided_slice %170 {offsets = [0, 0], sizes = [2, 32], strides = [1, 1]} : vector<2x64xf32> to vector<2x32xf32>
    %174 = arith.index_cast %c3_i32 : i32 to index
    %c0_84 = arith.constant 0 : index
    %c0_85 = arith.constant 0 : index
    %175 = vector.load %arg3[%174, %c0_84, %c0_85] : memref<8x2x64xf32, #tpu.memory_space<vmem>>, vector<1x2x32xf32>
    %176 = vector.shape_cast %175 : vector<1x2x32xf32> to vector<2x32xf32>
    %177 = vector.shape_cast %173 : vector<2x32xf32> to vector<1x2x32xf32>
    tpu.vector_store %arg3[%174, %c0_84, %c0_85], %177 {strides = array<i32>} : memref<8x2x64xf32, #tpu.memory_space<vmem>>, vector<1x2x32xf32>,
    %178 = vector.extract_strided_slice %170 {offsets = [0, 32], sizes = [2, 32], strides = [1, 1]} : vector<2x64xf32> to vector<2x32xf32>
    %c7_i32_86 = arith.constant 7 : i32
    %179 = arith.subi %c7_i32_86, %c3_i32 : i32
    %180 = arith.index_cast %179 : i32 to index
    %c0_87 = arith.constant 0 : index
    %c32_88 = arith.constant 32 : index
    %181 = vector.load %arg3[%180, %c0_87, %c32_88] : memref<8x2x64xf32, #tpu.memory_space<vmem>>, vector<1x2x32xf32>
    %182 = vector.shape_cast %181 : vector<1x2x32xf32> to vector<2x32xf32>
    %183 = vector.shape_cast %178 : vector<2x32xf32> to vector<1x2x32xf32>
    tpu.vector_store %arg3[%180, %c0_87, %c32_88], %183 {strides = array<i32>} : memref<8x2x64xf32, #tpu.memory_space<vmem>>, vector<1x2x32xf32>,
    %c4_i32 = arith.constant 4 : i32
    %184 = arith.index_cast %c4_i32 : i32 to index
    %c0_89 = arith.constant 0 : index
    %c0_90 = arith.constant 0 : index
    %185 = vector.load %arg1[%184, %c0_89, %c0_90] : memref<8x2x256xf32, #tpu.memory_space<vmem>>, vector<1x2x256xf32>
    %186 = vector.shape_cast %185 : vector<1x2x256xf32> to vector<2x256xf32>
    %c7_i32_91 = arith.constant 7 : i32
    %187 = arith.subi %c7_i32_91, %c4_i32 : i32
    %188 = arith.index_cast %187 : i32 to index
    %c0_92 = arith.constant 0 : index
    %c0_93 = arith.constant 0 : index
    %189 = vector.load %arg1[%188, %c0_92, %c0_93] : memref<8x2x256xf32, #tpu.memory_space<vmem>>, vector<1x2x256xf32>
    %190 = vector.shape_cast %189 : vector<1x2x256xf32> to vector<2x256xf32>
    %191 = arith.select %23, %186, %190 : vector<2x256xi1>, vector<2x256xf32>
    %c0_94 = arith.constant 0 : index
    %c0_95 = arith.constant 0 : index
    %192 = vector.load %arg4[%c0_94, %c0_95] : memref<2x64xf32, #tpu.memory_space<vmem>>, vector<2x64xf32>
    %cst_96 = arith.constant dense<0.000000e+00> : vector<2x256xf32>
    %193 = tpu.matmul %192, %4, %cst_96 {dimension_numbers = #tpu.dot_dimension_numbers<[1], [0], [0], [1], [0, 0, 1, 1], [], []>} : vector<2x64xf32>, vector<64x256xf32>, vector<2x256xf32> -> vector<2x256xf32>
    %194 = arith.addf %191, %193 : vector<2x256xf32>
    %195 = arith.negf %194 : vector<2x256xf32>
    %196 = math.exp %195 : vector<2x256xf32>
    %cst_97 = arith.constant 1.000000e+00 : f32
    %197 = vector.broadcast %cst_97 : f32 to vector<2x256xf32>
    %198 = arith.addf %197, %196 : vector<2x256xf32>
    %199 = arith.divf %197, %198 : vector<2x256xf32>
    %200 = math.tanh %194 : vector<2x256xf32>
    %201 = vector.extract_strided_slice %199 {offsets = [0, 0], sizes = [2, 64], strides = [1, 1]} : vector<2x256xf32> to vector<2x64xf32>
    %202 = vector.extract_strided_slice %199 {offsets = [0, 64], sizes = [2, 64], strides = [1, 1]} : vector<2x256xf32> to vector<2x64xf32>
    %203 = vector.extract_strided_slice %200 {offsets = [0, 128], sizes = [2, 64], strides = [1, 1]} : vector<2x256xf32> to vector<2x64xf32>
    %204 = vector.extract_strided_slice %199 {offsets = [0, 192], sizes = [2, 64], strides = [1, 1]} : vector<2x256xf32> to vector<2x64xf32>
    %c0_98 = arith.constant 0 : index
    %c0_99 = arith.constant 0 : index
    %205 = vector.load %arg5[%c0_98, %c0_99] : memref<2x64xf32, #tpu.memory_space<vmem>>, vector<2x64xf32>
    %206 = arith.mulf %202, %205 : vector<2x64xf32>
    %207 = arith.mulf %201, %203 : vector<2x64xf32>
    %208 = arith.addf %206, %207 : vector<2x64xf32>
    %209 = math.tanh %208 : vector<2x64xf32>
    %210 = arith.mulf %204, %209 : vector<2x64xf32>
    %c0_100 = arith.constant 0 : index
    %c0_101 = arith.constant 0 : index
    %211 = vector.load %arg5[%c0_100, %c0_101] : memref<2x64xf32, #tpu.memory_space<vmem>>, vector<2x64xf32>
    tpu.vector_store %arg5[%c0_100, %c0_101], %208 {strides = array<i32>} : memref<2x64xf32, #tpu.memory_space<vmem>>, vector<2x64xf32>,
    %c0_102 = arith.constant 0 : index
    %c0_103 = arith.constant 0 : index
    %212 = vector.load %arg4[%c0_102, %c0_103] : memref<2x64xf32, #tpu.memory_space<vmem>>, vector<2x64xf32>
    tpu.vector_store %arg4[%c0_102, %c0_103], %210 {strides = array<i32>} : memref<2x64xf32, #tpu.memory_space<vmem>>, vector<2x64xf32>,
    %213 = vector.extract_strided_slice %210 {offsets = [0, 0], sizes = [2, 32], strides = [1, 1]} : vector<2x64xf32> to vector<2x32xf32>
    %214 = arith.index_cast %c4_i32 : i32 to index
    %c0_104 = arith.constant 0 : index
    %c0_105 = arith.constant 0 : index
    %215 = vector.load %arg3[%214, %c0_104, %c0_105] : memref<8x2x64xf32, #tpu.memory_space<vmem>>, vector<1x2x32xf32>
    %216 = vector.shape_cast %215 : vector<1x2x32xf32> to vector<2x32xf32>
    %217 = vector.shape_cast %213 : vector<2x32xf32> to vector<1x2x32xf32>
    tpu.vector_store %arg3[%214, %c0_104, %c0_105], %217 {strides = array<i32>} : memref<8x2x64xf32, #tpu.memory_space<vmem>>, vector<1x2x32xf32>,
    %218 = vector.extract_strided_slice %210 {offsets = [0, 32], sizes = [2, 32], strides = [1, 1]} : vector<2x64xf32> to vector<2x32xf32>
    %c7_i32_106 = arith.constant 7 : i32
    %219 = arith.subi %c7_i32_106, %c4_i32 : i32
    %220 = arith.index_cast %219 : i32 to index
    %c0_107 = arith.constant 0 : index
    %c32_108 = arith.constant 32 : index
    %221 = vector.load %arg3[%220, %c0_107, %c32_108] : memref<8x2x64xf32, #tpu.memory_space<vmem>>, vector<1x2x32xf32>
    %222 = vector.shape_cast %221 : vector<1x2x32xf32> to vector<2x32xf32>
    %223 = vector.shape_cast %218 : vector<2x32xf32> to vector<1x2x32xf32>
    tpu.vector_store %arg3[%220, %c0_107, %c32_108], %223 {strides = array<i32>} : memref<8x2x64xf32, #tpu.memory_space<vmem>>, vector<1x2x32xf32>,
    %c5_i32 = arith.constant 5 : i32
    %224 = arith.index_cast %c5_i32 : i32 to index
    %c0_109 = arith.constant 0 : index
    %c0_110 = arith.constant 0 : index
    %225 = vector.load %arg1[%224, %c0_109, %c0_110] : memref<8x2x256xf32, #tpu.memory_space<vmem>>, vector<1x2x256xf32>
    %226 = vector.shape_cast %225 : vector<1x2x256xf32> to vector<2x256xf32>
    %c7_i32_111 = arith.constant 7 : i32
    %227 = arith.subi %c7_i32_111, %c5_i32 : i32
    %228 = arith.index_cast %227 : i32 to index
    %c0_112 = arith.constant 0 : index
    %c0_113 = arith.constant 0 : index
    %229 = vector.load %arg1[%228, %c0_112, %c0_113] : memref<8x2x256xf32, #tpu.memory_space<vmem>>, vector<1x2x256xf32>
    %230 = vector.shape_cast %229 : vector<1x2x256xf32> to vector<2x256xf32>
    %231 = arith.select %23, %226, %230 : vector<2x256xi1>, vector<2x256xf32>
    %c0_114 = arith.constant 0 : index
    %c0_115 = arith.constant 0 : index
    %232 = vector.load %arg4[%c0_114, %c0_115] : memref<2x64xf32, #tpu.memory_space<vmem>>, vector<2x64xf32>
    %cst_116 = arith.constant dense<0.000000e+00> : vector<2x256xf32>
    %233 = tpu.matmul %232, %4, %cst_116 {dimension_numbers = #tpu.dot_dimension_numbers<[1], [0], [0], [1], [0, 0, 1, 1], [], []>} : vector<2x64xf32>, vector<64x256xf32>, vector<2x256xf32> -> vector<2x256xf32>
    %234 = arith.addf %231, %233 : vector<2x256xf32>
    %235 = arith.negf %234 : vector<2x256xf32>
    %236 = math.exp %235 : vector<2x256xf32>
    %cst_117 = arith.constant 1.000000e+00 : f32
    %237 = vector.broadcast %cst_117 : f32 to vector<2x256xf32>
    %238 = arith.addf %237, %236 : vector<2x256xf32>
    %239 = arith.divf %237, %238 : vector<2x256xf32>
    %240 = math.tanh %234 : vector<2x256xf32>
    %241 = vector.extract_strided_slice %239 {offsets = [0, 0], sizes = [2, 64], strides = [1, 1]} : vector<2x256xf32> to vector<2x64xf32>
    %242 = vector.extract_strided_slice %239 {offsets = [0, 64], sizes = [2, 64], strides = [1, 1]} : vector<2x256xf32> to vector<2x64xf32>
    %243 = vector.extract_strided_slice %240 {offsets = [0, 128], sizes = [2, 64], strides = [1, 1]} : vector<2x256xf32> to vector<2x64xf32>
    %244 = vector.extract_strided_slice %239 {offsets = [0, 192], sizes = [2, 64], strides = [1, 1]} : vector<2x256xf32> to vector<2x64xf32>
    %c0_118 = arith.constant 0 : index
    %c0_119 = arith.constant 0 : index
    %245 = vector.load %arg5[%c0_118, %c0_119] : memref<2x64xf32, #tpu.memory_space<vmem>>, vector<2x64xf32>
    %246 = arith.mulf %242, %245 : vector<2x64xf32>
    %247 = arith.mulf %241, %243 : vector<2x64xf32>
    %248 = arith.addf %246, %247 : vector<2x64xf32>
    %249 = math.tanh %248 : vector<2x64xf32>
    %250 = arith.mulf %244, %249 : vector<2x64xf32>
    %c0_120 = arith.constant 0 : index
    %c0_121 = arith.constant 0 : index
    %251 = vector.load %arg5[%c0_120, %c0_121] : memref<2x64xf32, #tpu.memory_space<vmem>>, vector<2x64xf32>
    tpu.vector_store %arg5[%c0_120, %c0_121], %248 {strides = array<i32>} : memref<2x64xf32, #tpu.memory_space<vmem>>, vector<2x64xf32>,
    %c0_122 = arith.constant 0 : index
    %c0_123 = arith.constant 0 : index
    %252 = vector.load %arg4[%c0_122, %c0_123] : memref<2x64xf32, #tpu.memory_space<vmem>>, vector<2x64xf32>
    tpu.vector_store %arg4[%c0_122, %c0_123], %250 {strides = array<i32>} : memref<2x64xf32, #tpu.memory_space<vmem>>, vector<2x64xf32>,
    %253 = vector.extract_strided_slice %250 {offsets = [0, 0], sizes = [2, 32], strides = [1, 1]} : vector<2x64xf32> to vector<2x32xf32>
    %254 = arith.index_cast %c5_i32 : i32 to index
    %c0_124 = arith.constant 0 : index
    %c0_125 = arith.constant 0 : index
    %255 = vector.load %arg3[%254, %c0_124, %c0_125] : memref<8x2x64xf32, #tpu.memory_space<vmem>>, vector<1x2x32xf32>
    %256 = vector.shape_cast %255 : vector<1x2x32xf32> to vector<2x32xf32>
    %257 = vector.shape_cast %253 : vector<2x32xf32> to vector<1x2x32xf32>
    tpu.vector_store %arg3[%254, %c0_124, %c0_125], %257 {strides = array<i32>} : memref<8x2x64xf32, #tpu.memory_space<vmem>>, vector<1x2x32xf32>,
    %258 = vector.extract_strided_slice %250 {offsets = [0, 32], sizes = [2, 32], strides = [1, 1]} : vector<2x64xf32> to vector<2x32xf32>
    %c7_i32_126 = arith.constant 7 : i32
    %259 = arith.subi %c7_i32_126, %c5_i32 : i32
    %260 = arith.index_cast %259 : i32 to index
    %c0_127 = arith.constant 0 : index
    %c32_128 = arith.constant 32 : index
    %261 = vector.load %arg3[%260, %c0_127, %c32_128] : memref<8x2x64xf32, #tpu.memory_space<vmem>>, vector<1x2x32xf32>
    %262 = vector.shape_cast %261 : vector<1x2x32xf32> to vector<2x32xf32>
    %263 = vector.shape_cast %258 : vector<2x32xf32> to vector<1x2x32xf32>
    tpu.vector_store %arg3[%260, %c0_127, %c32_128], %263 {strides = array<i32>} : memref<8x2x64xf32, #tpu.memory_space<vmem>>, vector<1x2x32xf32>,
    %c6_i32 = arith.constant 6 : i32
    %264 = arith.index_cast %c6_i32 : i32 to index
    %c0_129 = arith.constant 0 : index
    %c0_130 = arith.constant 0 : index
    %265 = vector.load %arg1[%264, %c0_129, %c0_130] : memref<8x2x256xf32, #tpu.memory_space<vmem>>, vector<1x2x256xf32>
    %266 = vector.shape_cast %265 : vector<1x2x256xf32> to vector<2x256xf32>
    %c7_i32_131 = arith.constant 7 : i32
    %267 = arith.subi %c7_i32_131, %c6_i32 : i32
    %268 = arith.index_cast %267 : i32 to index
    %c0_132 = arith.constant 0 : index
    %c0_133 = arith.constant 0 : index
    %269 = vector.load %arg1[%268, %c0_132, %c0_133] : memref<8x2x256xf32, #tpu.memory_space<vmem>>, vector<1x2x256xf32>
    %270 = vector.shape_cast %269 : vector<1x2x256xf32> to vector<2x256xf32>
    %271 = arith.select %23, %266, %270 : vector<2x256xi1>, vector<2x256xf32>
    %c0_134 = arith.constant 0 : index
    %c0_135 = arith.constant 0 : index
    %272 = vector.load %arg4[%c0_134, %c0_135] : memref<2x64xf32, #tpu.memory_space<vmem>>, vector<2x64xf32>
    %cst_136 = arith.constant dense<0.000000e+00> : vector<2x256xf32>
    %273 = tpu.matmul %272, %4, %cst_136 {dimension_numbers = #tpu.dot_dimension_numbers<[1], [0], [0], [1], [0, 0, 1, 1], [], []>} : vector<2x64xf32>, vector<64x256xf32>, vector<2x256xf32> -> vector<2x256xf32>
    %274 = arith.addf %271, %273 : vector<2x256xf32>
    %275 = arith.negf %274 : vector<2x256xf32>
    %276 = math.exp %275 : vector<2x256xf32>
    %cst_137 = arith.constant 1.000000e+00 : f32
    %277 = vector.broadcast %cst_137 : f32 to vector<2x256xf32>
    %278 = arith.addf %277, %276 : vector<2x256xf32>
    %279 = arith.divf %277, %278 : vector<2x256xf32>
    %280 = math.tanh %274 : vector<2x256xf32>
    %281 = vector.extract_strided_slice %279 {offsets = [0, 0], sizes = [2, 64], strides = [1, 1]} : vector<2x256xf32> to vector<2x64xf32>
    %282 = vector.extract_strided_slice %279 {offsets = [0, 64], sizes = [2, 64], strides = [1, 1]} : vector<2x256xf32> to vector<2x64xf32>
    %283 = vector.extract_strided_slice %280 {offsets = [0, 128], sizes = [2, 64], strides = [1, 1]} : vector<2x256xf32> to vector<2x64xf32>
    %284 = vector.extract_strided_slice %279 {offsets = [0, 192], sizes = [2, 64], strides = [1, 1]} : vector<2x256xf32> to vector<2x64xf32>
    %c0_138 = arith.constant 0 : index
    %c0_139 = arith.constant 0 : index
    %285 = vector.load %arg5[%c0_138, %c0_139] : memref<2x64xf32, #tpu.memory_space<vmem>>, vector<2x64xf32>
    %286 = arith.mulf %282, %285 : vector<2x64xf32>
    %287 = arith.mulf %281, %283 : vector<2x64xf32>
    %288 = arith.addf %286, %287 : vector<2x64xf32>
    %289 = math.tanh %288 : vector<2x64xf32>
    %290 = arith.mulf %284, %289 : vector<2x64xf32>
    %c0_140 = arith.constant 0 : index
    %c0_141 = arith.constant 0 : index
    %291 = vector.load %arg5[%c0_140, %c0_141] : memref<2x64xf32, #tpu.memory_space<vmem>>, vector<2x64xf32>
    tpu.vector_store %arg5[%c0_140, %c0_141], %288 {strides = array<i32>} : memref<2x64xf32, #tpu.memory_space<vmem>>, vector<2x64xf32>,
    %c0_142 = arith.constant 0 : index
    %c0_143 = arith.constant 0 : index
    %292 = vector.load %arg4[%c0_142, %c0_143] : memref<2x64xf32, #tpu.memory_space<vmem>>, vector<2x64xf32>
    tpu.vector_store %arg4[%c0_142, %c0_143], %290 {strides = array<i32>} : memref<2x64xf32, #tpu.memory_space<vmem>>, vector<2x64xf32>,
    %293 = vector.extract_strided_slice %290 {offsets = [0, 0], sizes = [2, 32], strides = [1, 1]} : vector<2x64xf32> to vector<2x32xf32>
    %294 = arith.index_cast %c6_i32 : i32 to index
    %c0_144 = arith.constant 0 : index
    %c0_145 = arith.constant 0 : index
    %295 = vector.load %arg3[%294, %c0_144, %c0_145] : memref<8x2x64xf32, #tpu.memory_space<vmem>>, vector<1x2x32xf32>
    %296 = vector.shape_cast %295 : vector<1x2x32xf32> to vector<2x32xf32>
    %297 = vector.shape_cast %293 : vector<2x32xf32> to vector<1x2x32xf32>
    tpu.vector_store %arg3[%294, %c0_144, %c0_145], %297 {strides = array<i32>} : memref<8x2x64xf32, #tpu.memory_space<vmem>>, vector<1x2x32xf32>,
    %298 = vector.extract_strided_slice %290 {offsets = [0, 32], sizes = [2, 32], strides = [1, 1]} : vector<2x64xf32> to vector<2x32xf32>
    %c7_i32_146 = arith.constant 7 : i32
    %299 = arith.subi %c7_i32_146, %c6_i32 : i32
    %300 = arith.index_cast %299 : i32 to index
    %c0_147 = arith.constant 0 : index
    %c32_148 = arith.constant 32 : index
    %301 = vector.load %arg3[%300, %c0_147, %c32_148] : memref<8x2x64xf32, #tpu.memory_space<vmem>>, vector<1x2x32xf32>
    %302 = vector.shape_cast %301 : vector<1x2x32xf32> to vector<2x32xf32>
    %303 = vector.shape_cast %298 : vector<2x32xf32> to vector<1x2x32xf32>
    tpu.vector_store %arg3[%300, %c0_147, %c32_148], %303 {strides = array<i32>} : memref<8x2x64xf32, #tpu.memory_space<vmem>>, vector<1x2x32xf32>,
    %c7_i32_149 = arith.constant 7 : i32
    %304 = arith.index_cast %c7_i32_149 : i32 to index
    %c0_150 = arith.constant 0 : index
    %c0_151 = arith.constant 0 : index
    %305 = vector.load %arg1[%304, %c0_150, %c0_151] : memref<8x2x256xf32, #tpu.memory_space<vmem>>, vector<1x2x256xf32>
    %306 = vector.shape_cast %305 : vector<1x2x256xf32> to vector<2x256xf32>
    %c7_i32_152 = arith.constant 7 : i32
    %307 = arith.subi %c7_i32_152, %c7_i32_149 : i32
    %308 = arith.index_cast %307 : i32 to index
    %c0_153 = arith.constant 0 : index
    %c0_154 = arith.constant 0 : index
    %309 = vector.load %arg1[%308, %c0_153, %c0_154] : memref<8x2x256xf32, #tpu.memory_space<vmem>>, vector<1x2x256xf32>
    %310 = vector.shape_cast %309 : vector<1x2x256xf32> to vector<2x256xf32>
    %311 = arith.select %23, %306, %310 : vector<2x256xi1>, vector<2x256xf32>
    %c0_155 = arith.constant 0 : index
    %c0_156 = arith.constant 0 : index
    %312 = vector.load %arg4[%c0_155, %c0_156] : memref<2x64xf32, #tpu.memory_space<vmem>>, vector<2x64xf32>
    %cst_157 = arith.constant dense<0.000000e+00> : vector<2x256xf32>
    %313 = tpu.matmul %312, %4, %cst_157 {dimension_numbers = #tpu.dot_dimension_numbers<[1], [0], [0], [1], [0, 0, 1, 1], [], []>} : vector<2x64xf32>, vector<64x256xf32>, vector<2x256xf32> -> vector<2x256xf32>
    %314 = arith.addf %311, %313 : vector<2x256xf32>
    %315 = arith.negf %314 : vector<2x256xf32>
    %316 = math.exp %315 : vector<2x256xf32>
    %cst_158 = arith.constant 1.000000e+00 : f32
    %317 = vector.broadcast %cst_158 : f32 to vector<2x256xf32>
    %318 = arith.addf %317, %316 : vector<2x256xf32>
    %319 = arith.divf %317, %318 : vector<2x256xf32>
    %320 = math.tanh %314 : vector<2x256xf32>
    %321 = vector.extract_strided_slice %319 {offsets = [0, 0], sizes = [2, 64], strides = [1, 1]} : vector<2x256xf32> to vector<2x64xf32>
    %322 = vector.extract_strided_slice %319 {offsets = [0, 64], sizes = [2, 64], strides = [1, 1]} : vector<2x256xf32> to vector<2x64xf32>
    %323 = vector.extract_strided_slice %320 {offsets = [0, 128], sizes = [2, 64], strides = [1, 1]} : vector<2x256xf32> to vector<2x64xf32>
    %324 = vector.extract_strided_slice %319 {offsets = [0, 192], sizes = [2, 64], strides = [1, 1]} : vector<2x256xf32> to vector<2x64xf32>
    %c0_159 = arith.constant 0 : index
    %c0_160 = arith.constant 0 : index
    %325 = vector.load %arg5[%c0_159, %c0_160] : memref<2x64xf32, #tpu.memory_space<vmem>>, vector<2x64xf32>
    %326 = arith.mulf %322, %325 : vector<2x64xf32>
    %327 = arith.mulf %321, %323 : vector<2x64xf32>
    %328 = arith.addf %326, %327 : vector<2x64xf32>
    %329 = math.tanh %328 : vector<2x64xf32>
    %330 = arith.mulf %324, %329 : vector<2x64xf32>
    %c0_161 = arith.constant 0 : index
    %c0_162 = arith.constant 0 : index
    %331 = vector.load %arg5[%c0_161, %c0_162] : memref<2x64xf32, #tpu.memory_space<vmem>>, vector<2x64xf32>
    tpu.vector_store %arg5[%c0_161, %c0_162], %328 {strides = array<i32>} : memref<2x64xf32, #tpu.memory_space<vmem>>, vector<2x64xf32>,
    %c0_163 = arith.constant 0 : index
    %c0_164 = arith.constant 0 : index
    %332 = vector.load %arg4[%c0_163, %c0_164] : memref<2x64xf32, #tpu.memory_space<vmem>>, vector<2x64xf32>
    tpu.vector_store %arg4[%c0_163, %c0_164], %330 {strides = array<i32>} : memref<2x64xf32, #tpu.memory_space<vmem>>, vector<2x64xf32>,
    %333 = vector.extract_strided_slice %330 {offsets = [0, 0], sizes = [2, 32], strides = [1, 1]} : vector<2x64xf32> to vector<2x32xf32>
    %334 = arith.index_cast %c7_i32_149 : i32 to index
    %c0_165 = arith.constant 0 : index
    %c0_166 = arith.constant 0 : index
    %335 = vector.load %arg3[%334, %c0_165, %c0_166] : memref<8x2x64xf32, #tpu.memory_space<vmem>>, vector<1x2x32xf32>
    %336 = vector.shape_cast %335 : vector<1x2x32xf32> to vector<2x32xf32>
    %337 = vector.shape_cast %333 : vector<2x32xf32> to vector<1x2x32xf32>
    tpu.vector_store %arg3[%334, %c0_165, %c0_166], %337 {strides = array<i32>} : memref<8x2x64xf32, #tpu.memory_space<vmem>>, vector<1x2x32xf32>,
    %338 = vector.extract_strided_slice %330 {offsets = [0, 32], sizes = [2, 32], strides = [1, 1]} : vector<2x64xf32> to vector<2x32xf32>
    %c7_i32_167 = arith.constant 7 : i32
    %339 = arith.subi %c7_i32_167, %c7_i32_149 : i32
    %340 = arith.index_cast %339 : i32 to index
    %c0_168 = arith.constant 0 : index
    %c32_169 = arith.constant 32 : index
    %341 = vector.load %arg3[%340, %c0_168, %c32_169] : memref<8x2x64xf32, #tpu.memory_space<vmem>>, vector<1x2x32xf32>
    %342 = vector.shape_cast %341 : vector<1x2x32xf32> to vector<2x32xf32>
    %343 = vector.shape_cast %338 : vector<2x32xf32> to vector<1x2x32xf32>
    tpu.vector_store %arg3[%340, %c0_168, %c32_169], %343 {strides = array<i32>} : memref<8x2x64xf32, #tpu.memory_space<vmem>>, vector<1x2x32xf32>,
    %c8_i32 = arith.constant 8 : i32
    return
  }
  func.func @transform_0(%arg0: i32) -> (i32, i32, i32) {
    %c0_i32 = arith.constant 0 : i32
    %c0_i32_0 = arith.constant 0 : i32
    %c0_i32_1 = arith.constant 0 : i32
    %c0_i32_2 = arith.constant 0 : i32
    return %c0_i32, %c0_i32_0, %c0_i32_1 : i32, i32, i32
  }
  func.func @transform_1(%arg0: i32) -> (i32, i32) {
    %c0_i32 = arith.constant 0 : i32
    %c0_i32_0 = arith.constant 0 : i32
    %c0_i32_1 = arith.constant 0 : i32
    return %c0_i32, %c0_i32_0 : i32, i32
  }
  func.func @transform_2(%arg0: i32) -> (i32, i32, i32) {
    %c0_i32 = arith.constant 0 : i32
    %c0_i32_0 = arith.constant 0 : i32
    %c0_i32_1 = arith.constant 0 : i32
    %c0_i32_2 = arith.constant 0 : i32
    return %c0_i32, %c0_i32_0, %c0_i32_1 : i32, i32, i32
  }
}

</mosaic_0001>

<bundles_post_ra>
// kernel: tpu_custom_call.1
= control target key start
LH: loop header
LB: loop body
LE: loop exit
PB: predicated region body
PF: predicated region fallthrough
CT: control target
= control target key end

     0   :  { %7 = vsyncpa [#allocation5], 0  ;;  %s1685_s0 = inlined_call_operand.hbm [shape: f32[8,2,256], index: 0, kind: input, shape index: {}]   ;;  %s1686_s1 = inlined_call_operand.hbm [shape: f32[64,256], index: 1, kind: input, shape index: {}]   ;;  %s1687_s2 = inlined_call_operand.hbm [shape: f32[8,2,64], index: 2, kind: output, shape index: {}]  }
   0x1   :  { %8 = vsyncpa [#allocation8], 0 }
   0x2   :  { %9 = vsyncpa [#allocation6], 0  ;;  %s14_s11 = sshll.u32 %s1685_s0, 4  ;;  %s1361_s12 = smov [#allocation4]   ;;  %s15_s11 = int_to_ptr.hbm [resolvable:$true] %s14_s11 }
   0x3   :  { %s16_s13 = sshll.u32 %s1361_s12, 4  ;;  %s27_s16 = sshll.u32 %s1686_s1, 4  ;;  %s17_s13 = int_to_ptr.vmem [resolvable:$true] %s16_s13  ;;  %s28_s16 = int_to_ptr.hbm [resolvable:$true] %s27_s16 }
   0x4   :  { %s1362_s17 = smov 64   ;;  %s1363_s18 = smov 4  }
   0x5   :  { %22 = dma.hbm_to_vmem [thread:$0]  %s15_s11, 512, %s17_s13, [#allocation5], %s1362_s17, %s1362_s17, %s1363_s18  }
   0x6   :  { %s1364_s19 = smov [#allocation7]   ;;  %s1365_s21 = smov 256  }
   0x7   :  { %s29_s20 = sshll.u32 %s1364_s19, 4  ;;  %s1366_s22 = smov 16   ;;  %s30_s20 = int_to_ptr.vmem [resolvable:$true] %s29_s20 }
   0x8   :  { %35 = dma.hbm_to_vmem [thread:$0]  %s28_s16, 2048, %s30_s20, [#allocation8], %s1365_s21, %s1365_s21, %s1366_s22  }
   0x9   :  { %1355 = dma.done.wait [#allocation5], 512  }
   0xa   :  { %1356 = vsyncadd [#allocation5], 4294966784 }
   0xb   :  { %1357 = dma.done.wait [#allocation8], 2048  }
   0xc   :  { %1358 = vsyncadd [#allocation8], 4294965248  ;;  %vm44_vm0 = vcmask 517120   ;;  %v1367_v0 = vmov 0.0   ;;  %v1396_v1 = vld [vmem:[#allocation7 + $0x70] sm:$0xff]  ;;  %v1398_v2 = vld [vmem:[#allocation7 + $0x60] sm:$0xff]  ;;  %v63_v23 = vlaneseq }
   0xd   :  { %45 = vst.msk [vmem:[#allocation2] sm:$0x3] %vm44_vm0, %v1367_v0  ;;  %122 = vmatpush.msra.mxu0 %v1396_v1  ;;  %v1401_v3 = vld [vmem:[#allocation7 + $0x78] sm:$0xff]  ;;  %254 = vmatpush.msra.mxu2 %v1396_v1  ;;  %v1404_v4 = vld [vmem:[#allocation7 + $0x50] sm:$0xff]  ;;  %v1407_v5 = vld [vmem:[#allocation7 + $0x68] sm:$0xff]  ;;  %vm110_vm1 = vcmask 523264  }
   0xe   :  { %46 = vst.msk [vmem:[#allocation3] sm:$0x3] %vm44_vm0, %v1367_v0  ;;  %142 = vmatpush.msra.mxu1 %v1401_v3  ;;  %274 = vmatpush.msra.mxu3 %v1401_v3  ;;  %v1411_v6 = vld [vmem:[#allocation7 + $0x58] sm:$0xff]  ;;  %v1414_v7 = vld [vmem:[#allocation7 + $0x40] sm:$0xff]  ;;  %v1419_v8 = vld [vmem:[#allocation7 + $0x48] sm:$0xff]  ;;  %v64_v24 = vand.u32 127, %v63_v23 }
   0xf   :  { %123 = vmatpush.msra.mxu0 %v1398_v2  ;;  %255 = vmatpush.msra.mxu2 %v1398_v2  ;;  %v1422_v10 = vld [vmem:[#allocation7 + $0x30] sm:$0xff]  ;;  %v92_v11 = vld [vmem:[#allocation4] sm:$0xf]  ;;  %v1427_v12 = vld [vmem:[#allocation7 + $0x38] sm:$0xff]  ;;  %vm219_vm12 = vcmask 254976   ;;  %vm222_vm13 = vcmask 517376  }
  0x10   :  { %143 = vmatpush.msra.mxu1 %v1407_v5  ;;  %275 = vmatpush.msra.mxu3 %v1407_v5  ;;  %96 = vst [vmem:[#allocation1] ss:$4 sm:$0xff] %v92_v11  ;;  %v1430_v13 = vld [vmem:[#allocation7 + $0x20] sm:$0xff]  ;;  %v1435_v14 = vld [vmem:[#allocation7 + $0x28] sm:$0xff]  ;;  %v1438_v15 = vld [vmem:[#allocation7 + $0x10] sm:$0xff]  ;;  %v70_v25 = vand.u32 63, %v64_v24 }
  0x11   :  { %124 = vmatpush.msra.mxu0 %v1404_v4  ;;  %256 = vmatpush.msra.mxu2 %v1404_v4  ;;  %v1443_v16 = vld [vmem:[#allocation7 + $0x18] sm:$0xff]  ;;  %v1446_v17 = vld [vmem:[#allocation7] sm:$0xff]  ;;  %v1451_v20 = vld [vmem:[#allocation7 + $0x8] sm:$0xff]  ;;  %v65_v32 = vadd.s32 128, %v64_v24  ;;  %s1368_s0 = smov [#allocation9]   ;;  %s1131_s25 = sshll.u32 %s1687_s2, 4  ;;  %s1132_s25 = int_to_ptr.hbm [resolvable:$true] %s1131_s25 }
  0x12   :  { %144 = vmatpush.msra.mxu1 %v1411_v6  ;;  %276 = vmatpush.msra.mxu3 %v1411_v6  ;;  %v94_v18 = vld [vmem:[#allocation4 + $0x1c] sm:$0xf]  ;;  %vm1515_vm2 = vcmp.lt.s32.totalorder %v70_v25, 32  ;;  %s1129_s1 = sshll.u32 %s1368_s0, 4  ;;  %s1369_s26 = smov 32   ;;  %s1130_s1 = int_to_ptr.vmem [resolvable:$true] %s1129_s1 }
  0x13   :  { %125 = vmatpush.msra.mxu0 %v1414_v7  ;;  %257 = vmatpush.msra.mxu2 %v1414_v7  ;;  %v77_v33 = vand.u32 63, %v65_v32  ;;  %s1370_s27 = smov 2  }
  0x14   :  { %145 = vmatpush.msra.mxu1 %v1419_v8  ;;  %277 = vmatpush.msra.mxu3 %v1419_v8  ;;  %v109_v19 = vld [vmem:[#allocation2] sm:$0x3] }
  0x15   :  { %v195_v9 = vld [vmem:[#allocation3] sm:$0x3]  ;;  %126 = vmatpush.msra.mxu0 %v1422_v10  ;;  %258 = vmatpush.msra.mxu2 %v1422_v10  ;;  %vm1522_vm3 = vcmp.lt.s32.totalorder %v77_v33, 32 }
  0x16   :  { %197 = vrot.lane.b32.xlu0 %v195_v9, %s1362_s17  ;;  %146 = vmatpush.msra.mxu1 %v1427_v12 }
  0x17   :  { %127 = vmatpush.msra.mxu0 %v1430_v13  ;;  %278 = vmatpush.msra.mxu3 %v1427_v12  ;;  %v1455_v21 = vld.sshfl [vmem:[#allocation1] sm:$0xff pattern:$0x73625140]  ;;  %v1457_v22 = vld.sshfl [vmem:[#allocation1 + $0x8] sm:$0xff pattern:$0x73625140] }
  0x18   :  { %147 = vmatpush.msra.mxu1 %v1435_v14  ;;  %259 = vmatpush.msra.mxu2 %v1430_v13  ;;  %102 = vst [vmem:[#allocation1] ss:$4 sm:$0xff] %v94_v18 }
  0x19   :  { %128 = vmatpush.msra.mxu0 %v1438_v15  ;;  %279 = vmatpush.msra.mxu3 %v1435_v14 }
  0x1a   :  { %148 = vmatpush.msra.mxu1 %v1443_v16  ;;  %260 = vmatpush.msra.mxu2 %v1438_v15 }
  0x1b   :  { %129 = vmatpush.msra.mxu0 %v1446_v17  ;;  %280 = vmatpush.msra.mxu3 %v1443_v16 }
  0x1c   :  { %1145 = vmatmul.msk.f32.vlgmr.msra.gmra.mxu0 %vm110_vm1, %v109_v19  ;;  %149 = vmatpush.msra.mxu1 %v1451_v20 }
  0x1d   :  { %1146 = vmatmul.msk.f32.vlgmr.msra.gmra.mxu1 %vm110_vm1, %v109_v19  ;;  %261 = vmatpush.msra.mxu2 %v1446_v17 }
  0x1e   :  { %281 = vmatpush.msra.mxu3 %v1451_v20  ;;  %385 = vmatpush.msrb.mxu0 %v1396_v1 }
  0x1f   :  { %405 = vmatpush.msrb.mxu1 %v1401_v3  ;;  %516 = vmatpush.msrb.mxu2 %v1396_v1  ;;  %v103_v27 = vld.sshfl [vmem:[#allocation1] sm:$0xff pattern:$0x73625140]  ;;  %v104_v37 = vld.sshfl [vmem:[#allocation1 + $0x8] sm:$0xff pattern:$0x73625140] }
  0x20   :  { %386 = vmatpush.msrb.mxu0 %v1398_v2  ;;  %536 = vmatpush.msrb.mxu3 %v1401_v3  ;;  %v107_v28 = vsel %vm1515_vm2, %v1455_v21, %v103_v27  ;;  %v108_v38 = vsel %vm1522_vm3, %v1457_v22, %v104_v37 }
  0x21   :  { %406 = vmatpush.msrb.mxu1 %v1407_v5  ;;  %517 = vmatpush.msrb.mxu2 %v1398_v2 }
  0x22   :  { %387 = vmatpush.msrb.mxu0 %v1404_v4  ;;  %537 = vmatpush.msrb.mxu3 %v1407_v5 }
  0x23   :  { %407 = vmatpush.msrb.mxu1 %v1411_v6  ;;  %518 = vmatpush.msrb.mxu2 %v1404_v4 }
  0x24   :  { %388 = vmatpush.msrb.mxu0 %v1414_v7  ;;  %538 = vmatpush.msrb.mxu3 %v1411_v6 }
  0x25   :  { %408 = vmatpush.msrb.mxu1 %v1419_v8  ;;  %519 = vmatpush.msrb.mxu2 %v1414_v7 }
  0x26   :  { %389 = vmatpush.msrb.mxu0 %v1422_v10  ;;  %539 = vmatpush.msrb.mxu3 %v1419_v8 }
  0x27   :  { %409 = vmatpush.msrb.mxu1 %v1427_v12  ;;  %520 = vmatpush.msrb.mxu2 %v1422_v10 }
  0x28   :  { %390 = vmatpush.msrb.mxu0 %v1430_v13  ;;  %540 = vmatpush.msrb.mxu3 %v1427_v12 }
  0x29   :  { %410 = vmatpush.msrb.mxu1 %v1435_v14  ;;  %521 = vmatpush.msrb.mxu2 %v1430_v13 }
  0x2a   :  { %391 = vmatpush.msrb.mxu0 %v1438_v15  ;;  %541 = vmatpush.msrb.mxu3 %v1435_v14 }
  0x2b   :  { %411 = vmatpush.msrb.mxu1 %v1443_v16  ;;  %522 = vmatpush.msrb.mxu2 %v1438_v15 }
  0x2c   :  { %392 = vmatpush.msrb.mxu0 %v1446_v17  ;;  %542 = vmatpush.msrb.mxu3 %v1443_v16 }
  0x2d   :  { %412 = vmatpush.msrb.mxu1 %v1451_v20  ;;  %523 = vmatpush.msrb.mxu2 %v1446_v17 }
  0x2e   :  { %543 = vmatpush.msrb.mxu3 %v1451_v20  ;;  %645 = vmatpush.msra.mxu0 %v1396_v1 }
  0x2f   :  { %665 = vmatpush.msra.mxu1 %v1401_v3 }
  0x30   :  { %646 = vmatpush.msra.mxu0 %v1398_v2 }
  0x31   :  { %666 = vmatpush.msra.mxu1 %v1407_v5 }
  0x32   :  { %647 = vmatpush.msra.mxu0 %v1404_v4 }
  0x33   :  { %667 = vmatpush.msra.mxu1 %v1411_v6 }
  0x34   :  { %648 = vmatpush.msra.mxu0 %v1414_v7 }
  0x35   :  { %668 = vmatpush.msra.mxu1 %v1419_v8 }
  0x36   :  { %649 = vmatpush.msra.mxu0 %v1422_v10 }
  0x37   :  { %669 = vmatpush.msra.mxu1 %v1427_v12 }
  0x38   :  { %650 = vmatpush.msra.mxu0 %v1430_v13 }
  0x39   :  { %670 = vmatpush.msra.mxu1 %v1435_v14 }
  0x3a   :  { %651 = vmatpush.msra.mxu0 %v1438_v15 }
  0x3b   :  { %671 = vmatpush.msra.mxu1 %v1443_v16 }
  0x3c   :  { %652 = vmatpush.msra.mxu0 %v1446_v17 }
  0x3d   :  { %672 = vmatpush.msra.mxu1 %v1451_v20 }
  0x88   :  { %v198_v58 = vpop.permute.xlu0 %197 }
  0x99   :  { %v131_v29 = vpop.f32.mrf.mxu0 }
  0x9a   :  { %v154_v30 = vadd.f32 %v131_v29, %v107_v28  ;;  %v151_v39 = vpop.f32.mrf.mxu1  ;;  %v225_v29 = vld [vmem:[#allocation4 + $0x4] sm:$0xf] }
  0x9b   :  { %v155_v41 = vadd.f32 %v151_v39, %v108_v38  ;;  %229 = vst [vmem:[#allocation1] ss:$4 sm:$0xff] %v225_v29 }
  0x9c   :  { %v1147_v31 = vmul.f32 -1.442695, %v154_v30  ;;  %v227_v30 = vld [vmem:[#allocation4 + $0x18] sm:$0xf] }
  0x9d   :  { %v1148_v53 = vmul.f32 -1.442695, %v155_v41 }
  0x9e   :  { %1187 = vpow2.f32 %v1147_v31 }
  0xa2   :  { %v230_v31 = vld.sshfl [vmem:[#allocation1] sm:$0xff pattern:$0x73625140]  ;;  %v231_v32 = vld.sshfl [vmem:[#allocation1 + $0x8] sm:$0xff pattern:$0x73625140] }
  0xa3   :  { %235 = vst [vmem:[#allocation1] ss:$4 sm:$0xff] %v227_v30 }
  0xa4   :  { %v1188_v34 = vpop.eup %1187 }
  0xa5   :  { %v162_v35 = vadd.f32 1.0, %v1188_v34 }
  0xa7   :  { %1189 = vrcp.f32 %v162_v35  ;;  %v175_v44 = vand.u32 2147483648, %v162_v35  ;;  %v173_v46 = vand.u32 2147483647, %v162_v35  ;;  %vm169_vm5 = vweird.f32 %v162_v35 }
  0xa8   :  { %1191 = vtanh.f32 %v155_v41 }
  0xa9   :  { %v176_v49 = vor.u32 1.1754944e-38, %v175_v44  ;;  %vm174_vm7 = vcmp.eq.f32.partialorder %v173_v46, 8.507059e+37  ;;  %1193 = vpow2.f32 %v1148_v53 }
  0xaa   :  { %v236_v33 = vld.sshfl [vmem:[#allocation1] sm:$0xff pattern:$0x73625140]  ;;  %v237_v41 = vld.sshfl [vmem:[#allocation1 + $0x8] sm:$0xff pattern:$0x73625140] }
  0xab   :  { %v240_v34 = vsel %vm1515_vm2, %v230_v31, %v236_v33  ;;  %v356_v33 = vld [vmem:[#allocation4 + $0x8] sm:$0xf] }
  0xac   :  { %360 = vst [vmem:[#allocation1] ss:$4 sm:$0xff] %v356_v33 }
  0xad   :  { %v1190_v40 = vpop.eup %1189 }
  0xae   :  { %v165_v42 = vmul.f32 %v1190_v40, %v162_v35  ;;  %vm170_vm4 = vweird.f32 %v1190_v40  ;;  %v1192_v48 = vpop.eup %1191 }
  0xaf   :  { %vm171_vm6 = vmor %vm169_vm5, %vm170_vm4  ;;  %v1194_v54 = vpop.eup %1193 }
  0xb0   :  { %v166_v43 = vsub.f32 1.0, %v165_v42  ;;  %v163_v55 = vadd.f32 1.0, %v1194_v54  ;;  %v241_v42 = vsel %vm1522_vm3, %v231_v32, %v237_v41 }
  0xb2   :  { %v167_v45 = vmul.f32 %v1190_v40, %v166_v43  ;;  %1195 = vrcp.f32 %v163_v55  ;;  %vm184_vm8 = vweird.f32 %v163_v55  ;;  %v190_v0 = vand.u32 2147483648, %v163_v55 }
  0xb3   :  { %v188_v11 = vand.u32 2147483647, %v163_v55 }
  0xb4   :  { %v168_v47 = vadd.f32 %v1190_v40, %v167_v45  ;;  %v191_v18 = vor.u32 1.1754944e-38, %v190_v0 }
  0xb5   :  { %vm189_vm11 = vcmp.eq.f32.partialorder %v188_v11, 8.507059e+37 }
  0xb6   :  { %v172_v50 = vsel %vm171_vm6, %v1190_v40, %v168_v47 }
  0xb7   :  { %v177_v51 = vsel %vm174_vm7, %v176_v49, %v172_v50 }
  0xb8   :  { %v201_v52 = vmul.f32 %v1192_v48, %v177_v51  ;;  %v1196_v56 = vpop.eup %1195  ;;  %v200_v61 = vmul.f32 %v198_v58, %v177_v51 }
  0xb9   :  { %v180_v57 = vmul.f32 %v1196_v56, %v163_v55  ;;  %vm185_vm9 = vweird.f32 %v1196_v56 }
  0xba   :  { %203 = vrot.lane.b32.xlu0 %v201_v52, %s1362_s17  ;;  %vm186_vm10 = vmor %vm184_vm8, %vm185_vm9 }
  0xbb   :  { %v181_v59 = vsub.f32 1.0, %v180_v57 }
  0xbd   :  { %v182_v60 = vmul.f32 %v1196_v56, %v181_v59 }
  0xbf   :  { %v183_v9 = vadd.f32 %v1196_v56, %v182_v60 }
  0xc1   :  { %v187_v19 = vsel %vm186_vm10, %v1196_v56, %v183_v9 }
  0xc2   :  { %v192_v22 = vsel %vm189_vm11, %v191_v18, %v187_v19 }
 0x12c   :  { %v204_v62 = vpop.permute.xlu0 %203 }
 0x12d   :  { %v206_v63 = vadd.f32 %v204_v62, %v200_v61 }
 0x12f   :  { %1197 = vtanh.f32 %v206_v63 }
 0x135   :  { %v1198_v21 = vpop.eup %1197 }
 0x136   :  { %v208_v23 = vmul.f32 %v1198_v21, %v192_v22 }
 0x138   :  { %215 = vrot.lane.b32.xlu1 %v208_v23, %s1362_s17 }
 0x140   :  { %210 = vrot.lane.b32.xlu1 %v206_v63, %s1362_s17 }
 0x1aa   :  { %v216_v24 = vpop.permute.xlu1 %215 }
 0x1ab   :  { %218 = vst.msk [vmem:[#allocation2] sm:$0x3] %vm44_vm0, %v216_v24 }
 0x1ac   :  { %220 = vst.msk [vmem:[#allocation9] sm:$0x3] %vm219_vm12, %v216_v24 }
 0x1ad   :  { %223 = vst.msk [vmem:[#allocation9 + $0xe] sm:$0x3] %vm222_vm13, %v216_v24 }
 0x1b2   :  { %v211_v25 = vpop.permute.xlu1 %210  ;;  %v242_v27 = vld [vmem:[#allocation2] sm:$0x3] }
 0x1b3   :  { %213 = vst.msk [vmem:[#allocation3] sm:$0x3] %vm44_vm0, %v211_v25  ;;  %1149 = vmatmul.msk.f32.vlgmr.msra.gmra.mxu2 %vm110_vm1, %v242_v27  ;;  %1150 = vmatmul.msk.f32.vlgmr.msra.gmra.mxu3 %vm110_vm1, %v242_v27 }
 0x1b4   :  { %772 = vmatpush.msra.mxu2 %v1396_v1  ;;  %792 = vmatpush.msra.mxu3 %v1401_v3 }
 0x1b6   :  { %773 = vmatpush.msra.mxu2 %v1398_v2  ;;  %793 = vmatpush.msra.mxu3 %v1407_v5 }
 0x1b8   :  { %774 = vmatpush.msra.mxu2 %v1404_v4  ;;  %794 = vmatpush.msra.mxu3 %v1411_v6 }
 0x1ba   :  { %v327_v28 = vld [vmem:[#allocation3] sm:$0x3]  ;;  %775 = vmatpush.msra.mxu2 %v1414_v7  ;;  %795 = vmatpush.msra.mxu3 %v1419_v8 }
 0x1bb   :  { %329 = vrot.lane.b32.xlu2 %v327_v28, %s1362_s17 }
 0x1bc   :  { %776 = vmatpush.msra.mxu2 %v1422_v10  ;;  %796 = vmatpush.msra.mxu3 %v1427_v12 }
 0x1be   :  { %777 = vmatpush.msra.mxu2 %v1430_v13  ;;  %797 = vmatpush.msra.mxu3 %v1435_v14 }
 0x1c0   :  { %778 = vmatpush.msra.mxu2 %v1438_v15  ;;  %798 = vmatpush.msra.mxu3 %v1443_v16 }
 0x1c2   :  { %779 = vmatpush.msra.mxu2 %v1446_v17  ;;  %799 = vmatpush.msra.mxu3 %v1451_v20 }
 0x215   :  { %v330_v62 = vpop.permute.xlu2 %329 }
 0x236   :  { %v263_v35 = vpop.f32.mrf.mxu2  ;;  %v283_v43 = vpop.f32.mrf.mxu3 }
 0x237   :  { %v286_v37 = vadd.f32 %v263_v35, %v240_v34  ;;  %v287_v45 = vadd.f32 %v283_v43, %v241_v42  ;;  %v358_v34 = vld [vmem:[#allocation4 + $0x14] sm:$0xf] }
 0x238   :  { %v361_v35 = vld.sshfl [vmem:[#allocation1] sm:$0xff pattern:$0x73625140] }
 0x239   :  { %v1151_v38 = vmul.f32 -1.442695, %v286_v37  ;;  %v1152_v57 = vmul.f32 -1.442695, %v287_v45 }
 0x23a   :  { %v362_v37 = vld.sshfl [vmem:[#allocation1 + $0x8] sm:$0xff pattern:$0x73625140] }
 0x23b   :  { %1199 = vpow2.f32 %v1151_v38  ;;  %366 = vst [vmem:[#allocation1] ss:$4 sm:$0xff] %v358_v34 }
 0x241   :  { %v1200_v39 = vpop.eup %1199 }
 0x242   :  { %v294_v40 = vadd.f32 1.0, %v1200_v39  ;;  %v367_v38 = vld.sshfl [vmem:[#allocation1] sm:$0xff pattern:$0x73625140] }
 0x243   :  { %v371_v39 = vsel %vm1515_vm2, %v361_v35, %v367_v38 }
 0x244   :  { %1201 = vrcp.f32 %v294_v40  ;;  %v307_v48 = vand.u32 2147483648, %v294_v40  ;;  %v305_v50 = vand.u32 2147483647, %v294_v40  ;;  %vm301_vm15 = vweird.f32 %v294_v40 }
 0x245   :  { %1203 = vtanh.f32 %v287_v45  ;;  %v368_v45 = vld.sshfl [vmem:[#allocation1 + $0x8] sm:$0xff pattern:$0x73625140] }
 0x246   :  { %v308_v52 = vor.u32 1.1754944e-38, %v307_v48  ;;  %vm306_vm5 = vcmp.eq.f32.partialorder %v305_v50, 8.507059e+37  ;;  %1205 = vpow2.f32 %v1152_v57 }
 0x24a   :  { %v1202_v44 = vpop.eup %1201 }
 0x24b   :  { %v297_v46 = vmul.f32 %v1202_v44, %v294_v40  ;;  %vm302_vm14 = vweird.f32 %v1202_v44  ;;  %v1204_v54 = vpop.eup %1203 }
 0x24c   :  { %vm303_vm4 = vmor %vm301_vm15, %vm302_vm14  ;;  %v1206_v58 = vpop.eup %1205 }
 0x24d   :  { %v298_v47 = vsub.f32 1.0, %v297_v46  ;;  %v295_v59 = vadd.f32 1.0, %v1206_v58  ;;  %v372_v46 = vsel %vm1522_vm3, %v362_v37, %v368_v45 }
 0x24f   :  { %v299_v49 = vmul.f32 %v1202_v44, %v298_v47  ;;  %1207 = vrcp.f32 %v295_v59  ;;  %v322_v21 = vand.u32 2147483648, %v295_v59  ;;  %vm316_vm7 = vweird.f32 %v295_v59 }
 0x250   :  { %v320_v22 = vand.u32 2147483647, %v295_v59 }
 0x251   :  { %v300_v51 = vadd.f32 %v1202_v44, %v299_v49  ;;  %v323_v24 = vor.u32 1.1754944e-38, %v322_v21 }
 0x252   :  { %vm321_vm9 = vcmp.eq.f32.partialorder %v320_v22, 8.507059e+37 }
 0x253   :  { %v304_v53 = vsel %vm303_vm4, %v1202_v44, %v300_v51 }
 0x254   :  { %v309_v55 = vsel %vm306_vm5, %v308_v52, %v304_v53 }
 0x255   :  { %v333_v56 = vmul.f32 %v1204_v54, %v309_v55  ;;  %v1208_v60 = vpop.eup %1207  ;;  %v332_v9 = vmul.f32 %v330_v62, %v309_v55 }
 0x256   :  { %v312_v61 = vmul.f32 %v1208_v60, %v295_v59  ;;  %vm317_vm6 = vweird.f32 %v1208_v60 }
 0x257   :  { %335 = vrot.lane.b32.xlu2 %v333_v56, %s1362_s17  ;;  %vm318_vm8 = vmor %vm316_vm7, %vm317_vm6 }
 0x258   :  { %v313_v63 = vsub.f32 1.0, %v312_v61 }
 0x25a   :  { %v314_v0 = vmul.f32 %v1208_v60, %v313_v63 }
 0x25c   :  { %v315_v19 = vadd.f32 %v1208_v60, %v314_v0 }
 0x25e   :  { %v319_v23 = vsel %vm318_vm8, %v1208_v60, %v315_v19 }
 0x25f   :  { %v324_v27 = vsel %vm321_vm9, %v323_v24, %v319_v23 }
 0x2b1   :  { %v336_v11 = vpop.permute.xlu2 %335 }
 0x2b2   :  { %v338_v18 = vadd.f32 %v336_v11, %v332_v9 }
 0x2b4   :  { %1209 = vtanh.f32 %v338_v18  ;;  %342 = vrot.lane.b32.xlu1 %v338_v18, %s1362_s17 }
 0x2ba   :  { %v1210_v25 = vpop.eup %1209 }
 0x2bb   :  { %v340_v28 = vmul.f32 %v1210_v25, %v324_v27 }
 0x2bd   :  { %347 = vrot.lane.b32.xlu0 %v340_v28, %s1362_s17 }
 0x326   :  { %v343_v29 = vpop.permute.xlu1 %342 }
 0x327   :  { %345 = vst.msk [vmem:[#allocation3] sm:$0x3] %vm44_vm0, %v343_v29 }
 0x32e   :  { %v458_v30 = vld [vmem:[#allocation3] sm:$0x3] }
 0x32f   :  { %460 = vrot.lane.b32.xlu2 %v458_v30, %s1362_s17  ;;  %v348_v31 = vpop.permute.xlu0 %347 }
 0x330   :  { %350 = vst.msk [vmem:[#allocation2] sm:$0x3] %vm44_vm0, %v348_v31 }
 0x331   :  { %352 = vst.msk [vmem:[#allocation9 + $0x2] sm:$0x3] %vm219_vm12, %v348_v31 }
 0x332   :  { %354 = vst.msk [vmem:[#allocation9 + $0xc] sm:$0x3] %vm222_vm13, %v348_v31 }
 0x337   :  { %v373_v32 = vld [vmem:[#allocation2] sm:$0x3] }
 0x338   :  { %1153 = vmatmul.msk.f32.vlgmr.msrb.gmra.mxu0 %vm110_vm1, %v373_v32  ;;  %1154 = vmatmul.msk.f32.vlgmr.msrb.gmra.mxu1 %vm110_vm1, %v373_v32 }
 0x339   :  { %899 = vmatpush.msrb.mxu0 %v1396_v1  ;;  %919 = vmatpush.msrb.mxu1 %v1401_v3 }
 0x33b   :  { %900 = vmatpush.msrb.mxu0 %v1398_v2  ;;  %920 = vmatpush.msrb.mxu1 %v1407_v5 }
 0x33d   :  { %901 = vmatpush.msrb.mxu0 %v1404_v4  ;;  %921 = vmatpush.msrb.mxu1 %v1411_v6 }
 0x33f   :  { %902 = vmatpush.msrb.mxu0 %v1414_v7  ;;  %922 = vmatpush.msrb.mxu1 %v1419_v8 }
 0x341   :  { %903 = vmatpush.msrb.mxu0 %v1422_v10  ;;  %923 = vmatpush.msrb.mxu1 %v1427_v12 }
 0x343   :  { %904 = vmatpush.msrb.mxu0 %v1430_v13  ;;  %924 = vmatpush.msrb.mxu1 %v1435_v14 }
 0x345   :  { %905 = vmatpush.msrb.mxu0 %v1438_v15  ;;  %925 = vmatpush.msrb.mxu1 %v1443_v16 }
 0x347   :  { %906 = vmatpush.msrb.mxu0 %v1446_v17  ;;  %926 = vmatpush.msrb.mxu1 %v1451_v20 }
 0x389   :  { %v461_v18 = vpop.permute.xlu2 %460 }
 0x3b5   :  { %v394_v40 = vpop.f32.mrf.mxu0  ;;  %v414_v47 = vpop.f32.mrf.mxu1 }
 0x3b6   :  { %v417_v41 = vadd.f32 %v394_v40, %v371_v39  ;;  %v418_v49 = vadd.f32 %v414_v47, %v372_v46 }
 0x3b8   :  { %v1155_v42 = vmul.f32 -1.442695, %v417_v41  ;;  %v1156_v61 = vmul.f32 -1.442695, %v418_v49 }
 0x3ba   :  { %1211 = vpow2.f32 %v1155_v42 }
 0x3c0   :  { %v1212_v43 = vpop.eup %1211 }
 0x3c1   :  { %v425_v44 = vadd.f32 1.0, %v1212_v43 }
 0x3c3   :  { %1213 = vrcp.f32 %v425_v44  ;;  %v438_v52 = vand.u32 2147483648, %v425_v44  ;;  %v436_v54 = vand.u32 2147483647, %v425_v44  ;;  %vm432_vm11 = vweird.f32 %v425_v44 }
 0x3c4   :  { %1215 = vtanh.f32 %v418_v49 }
 0x3c5   :  { %v439_v56 = vor.u32 1.1754944e-38, %v438_v52  ;;  %vm437_vm15 = vcmp.eq.f32.partialorder %v436_v54, 8.507059e+37  ;;  %1217 = vpow2.f32 %v1156_v61 }
 0x3c9   :  { %v1214_v48 = vpop.eup %1213 }
 0x3ca   :  { %v428_v50 = vmul.f32 %v1214_v48, %v425_v44  ;;  %vm433_vm10 = vweird.f32 %v1214_v48  ;;  %v1216_v58 = vpop.eup %1215 }
 0x3cb   :  { %vm434_vm14 = vmor %vm432_vm11, %vm433_vm10  ;;  %v1218_v62 = vpop.eup %1217 }
 0x3cc   :  { %v429_v51 = vsub.f32 1.0, %v428_v50  ;;  %v426_v63 = vadd.f32 1.0, %v1218_v62 }
 0x3ce   :  { %v430_v53 = vmul.f32 %v1214_v48, %v429_v51  ;;  %1219 = vrcp.f32 %v426_v63  ;;  %v453_v25 = vand.u32 2147483648, %v426_v63  ;;  %vm447_vm5 = vweird.f32 %v426_v63 }
 0x3cf   :  { %v451_v27 = vand.u32 2147483647, %v426_v63 }
 0x3d0   :  { %v431_v55 = vadd.f32 %v1214_v48, %v430_v53  ;;  %v454_v29 = vor.u32 1.1754944e-38, %v453_v25 }
 0x3d1   :  { %vm452_vm7 = vcmp.eq.f32.partialorder %v451_v27, 8.507059e+37 }
 0x3d2   :  { %v435_v57 = vsel %vm434_vm14, %v1214_v48, %v431_v55 }
 0x3d3   :  { %v440_v59 = vsel %vm437_vm15, %v439_v56, %v435_v57 }
 0x3d4   :  { %v464_v60 = vmul.f32 %v1216_v58, %v440_v59  ;;  %v1220_v0 = vpop.eup %1219  ;;  %v463_v21 = vmul.f32 %v461_v18, %v440_v59 }
 0x3d5   :  { %v443_v9 = vmul.f32 %v1220_v0, %v426_v63  ;;  %vm448_vm4 = vweird.f32 %v1220_v0 }
 0x3d6   :  { %466 = vrot.lane.b32.xlu0 %v464_v60, %s1362_s17  ;;  %vm449_vm6 = vmor %vm447_vm5, %vm448_vm4 }
 0x3d7   :  { %v444_v11 = vsub.f32 1.0, %v443_v9 }
 0x3d9   :  { %v445_v19 = vmul.f32 %v1220_v0, %v444_v11 }
 0x3db   :  { %v446_v24 = vadd.f32 %v1220_v0, %v445_v19  ;;  %v617_v19 = vld [vmem:[#allocation4 + $0x10] sm:$0xf] }
 0x3dd   :  { %v450_v28 = vsel %vm449_vm6, %v1220_v0, %v446_v24 }
 0x3de   :  { %v455_v31 = vsel %vm452_vm7, %v454_v29, %v450_v28 }
 0x448   :  { %v467_v22 = vpop.permute.xlu0 %466 }
 0x449   :  { %v469_v23 = vadd.f32 %v467_v22, %v463_v21  ;;  %v618_v22 = vld [vmem:[#allocation4 + $0xc] sm:$0xf] }
 0x44b   :  { %1221 = vtanh.f32 %v469_v23  ;;  %473 = vrot.lane.b32.xlu2 %v469_v23, %s1362_s17 }
 0x451   :  { %v1222_v30 = vpop.eup %1221 }
 0x452   :  { %v471_v32 = vmul.f32 %v1222_v30, %v455_v31 }
 0x454   :  { %478 = vrot.lane.b32.xlu1 %v471_v32, %s1362_s17 }
 0x4a5   :  { %v474_v33 = vpop.permute.xlu2 %473 }
 0x4a6   :  { %476 = vst.msk [vmem:[#allocation3] sm:$0x3] %vm44_vm0, %v474_v33 }
 0x4ad   :  { %v589_v34 = vld [vmem:[#allocation3] sm:$0x3] }
 0x4ae   :  { %591 = vrot.lane.b32.xlu0 %v589_v34, %s1362_s17 }
 0x4c6   :  { %v479_v35 = vpop.permute.xlu1 %478 }
 0x4c7   :  { %481 = vst.msk [vmem:[#allocation2] sm:$0x3] %vm44_vm0, %v479_v35 }
 0x4c8   :  { %483 = vst.msk [vmem:[#allocation9 + $0x4] sm:$0x3] %vm219_vm12, %v479_v35 }
 0x4c9   :  { %485 = vst.msk [vmem:[#allocation9 + $0xa] sm:$0x3] %vm222_vm13, %v479_v35 }
 0x4ce   :  { %v504_v37 = vld [vmem:[#allocation2] sm:$0x3] }
 0x4cf   :  { %1157 = vmatmul.msk.f32.vlgmr.msrb.gmra.mxu2 %vm110_vm1, %v504_v37  ;;  %1158 = vmatmul.msk.f32.vlgmr.msrb.gmra.mxu3 %vm110_vm1, %v504_v37 }
 0x4d0   :  { %1026 = vmatpush.msrb.mxu2 %v1396_v1  ;;  %1046 = vmatpush.msrb.mxu3 %v1401_v3  ;;  %v487_v1 = vld [vmem:[#allocation4 + $0xc] sm:$0xf] }
 0x4d1   :  { %491 = vst [vmem:[#allocation1] ss:$4 sm:$0xff] %v487_v1 }
 0x4d2   :  { %1027 = vmatpush.msrb.mxu2 %v1398_v2  ;;  %1047 = vmatpush.msrb.mxu3 %v1407_v5  ;;  %v489_v2 = vld [vmem:[#allocation4 + $0x10] sm:$0xf] }
 0x4d4   :  { %1028 = vmatpush.msrb.mxu2 %v1404_v4  ;;  %1048 = vmatpush.msrb.mxu3 %v1411_v6 }
 0x4d6   :  { %1029 = vmatpush.msrb.mxu2 %v1414_v7  ;;  %1049 = vmatpush.msrb.mxu3 %v1419_v8 }
 0x4d8   :  { %1030 = vmatpush.msrb.mxu2 %v1422_v10  ;;  %1050 = vmatpush.msrb.mxu3 %v1427_v12  ;;  %v492_v3 = vld.sshfl [vmem:[#allocation1] sm:$0xff pattern:$0x73625140]  ;;  %v493_v4 = vld.sshfl [vmem:[#allocation1 + $0x8] sm:$0xff pattern:$0x73625140] }
 0x4d9   :  { %497 = vst [vmem:[#allocation1] ss:$4 sm:$0xff] %v489_v2 }
 0x4da   :  { %1031 = vmatpush.msrb.mxu2 %v1430_v13  ;;  %1051 = vmatpush.msrb.mxu3 %v1435_v14 }
 0x4dc   :  { %1032 = vmatpush.msrb.mxu2 %v1438_v15  ;;  %1052 = vmatpush.msrb.mxu3 %v1443_v16 }
 0x4de   :  { %1033 = vmatpush.msrb.mxu2 %v1446_v17  ;;  %1053 = vmatpush.msrb.mxu3 %v1451_v20 }
 0x4e0   :  { %v498_v5 = vld.sshfl [vmem:[#allocation1] sm:$0xff pattern:$0x73625140]  ;;  %v499_v14 = vld.sshfl [vmem:[#allocation1 + $0x8] sm:$0xff pattern:$0x73625140] }
 0x4e1   :  { %v502_v6 = vsel %vm1515_vm2, %v492_v3, %v498_v5  ;;  %v503_v15 = vsel %vm1522_vm3, %v493_v4, %v499_v14  ;;  %620 = vst [vmem:[#allocation1] ss:$4 sm:$0xff] %v617_v19 }
 0x4e8   :  { %v621_v23 = vld.sshfl [vmem:[#allocation1] sm:$0xff pattern:$0x73625140]  ;;  %v622_v24 = vld.sshfl [vmem:[#allocation1 + $0x8] sm:$0xff pattern:$0x73625140] }
 0x4e9   :  { %626 = vst [vmem:[#allocation1] ss:$4 sm:$0xff] %v618_v22 }
 0x4f0   :  { %v627_v29 = vld.sshfl [vmem:[#allocation1] sm:$0xff pattern:$0x73625140]  ;;  %v628_v37 = vld.sshfl [vmem:[#allocation1 + $0x8] sm:$0xff pattern:$0x73625140] }
 0x4f1   :  { %v631_v30 = vsel %vm1515_vm2, %v621_v23, %v627_v29  ;;  %v632_v1 = vsel %vm1522_vm3, %v622_v24, %v628_v37 }
 0x520   :  { %v592_v55 = vpop.permute.xlu0 %591 }
 0x552   :  { %v525_v7 = vpop.f32.mrf.mxu2  ;;  %v545_v16 = vpop.f32.mrf.mxu3 }
 0x553   :  { %v548_v8 = vadd.f32 %v525_v7, %v502_v6  ;;  %v549_v20 = vadd.f32 %v545_v16, %v503_v15 }
 0x555   :  { %v1159_v10 = vmul.f32 -1.442695, %v548_v8  ;;  %v1160_v49 = vmul.f32 -1.442695, %v549_v20 }
 0x557   :  { %1223 = vpow2.f32 %v1159_v10 }
 0x55d   :  { %v1224_v12 = vpop.eup %1223 }
 0x55e   :  { %v556_v13 = vadd.f32 1.0, %v1224_v12 }
 0x560   :  { %1225 = vrcp.f32 %v556_v13  ;;  %v569_v40 = vand.u32 2147483648, %v556_v13  ;;  %v567_v42 = vand.u32 2147483647, %v556_v13  ;;  %vm563_vm9 = vweird.f32 %v556_v13 }
 0x561   :  { %1227 = vtanh.f32 %v549_v20 }
 0x562   :  { %v570_v44 = vor.u32 1.1754944e-38, %v569_v40  ;;  %vm568_vm11 = vcmp.eq.f32.partialorder %v567_v42, 8.507059e+37  ;;  %1229 = vpow2.f32 %v1160_v49 }
 0x566   :  { %v1226_v17 = vpop.eup %1225 }
 0x567   :  { %v559_v38 = vmul.f32 %v1226_v17, %v556_v13  ;;  %vm564_vm8 = vweird.f32 %v1226_v17  ;;  %v1228_v46 = vpop.eup %1227 }
 0x568   :  { %vm565_vm10 = vmor %vm563_vm9, %vm564_vm8  ;;  %v1230_v50 = vpop.eup %1229 }
 0x569   :  { %v560_v39 = vsub.f32 1.0, %v559_v38  ;;  %v557_v51 = vadd.f32 1.0, %v1230_v50 }
 0x56b   :  { %v561_v41 = vmul.f32 %v1226_v17, %v560_v39  ;;  %1231 = vrcp.f32 %v557_v51  ;;  %v584_v61 = vand.u32 2147483648, %v557_v51  ;;  %vm578_vm15 = vweird.f32 %v557_v51 }
 0x56c   :  { %v582_v62 = vand.u32 2147483647, %v557_v51 }
 0x56d   :  { %v562_v43 = vadd.f32 %v1226_v17, %v561_v41  ;;  %v585_v0 = vor.u32 1.1754944e-38, %v584_v61  ;;  %v745_v61 = vld [vmem:[#allocation4 + $0x8] sm:$0xf] }
 0x56e   :  { %vm583_vm5 = vcmp.eq.f32.partialorder %v582_v62, 8.507059e+37 }
 0x56f   :  { %v566_v45 = vsel %vm565_vm10, %v1226_v17, %v562_v43 }
 0x570   :  { %v571_v47 = vsel %vm568_vm11, %v570_v44, %v566_v45 }
 0x571   :  { %v595_v48 = vmul.f32 %v1228_v46, %v571_v47  ;;  %v1232_v52 = vpop.eup %1231  ;;  %v594_v57 = vmul.f32 %v592_v55, %v571_v47 }
 0x572   :  { %v574_v53 = vmul.f32 %v1232_v52, %v557_v51  ;;  %vm579_vm14 = vweird.f32 %v1232_v52 }
 0x573   :  { %597 = vrot.lane.b32.xlu1 %v595_v48, %s1362_s17  ;;  %vm580_vm4 = vmor %vm578_vm15, %vm579_vm14 }
 0x574   :  { %v575_v54 = vsub.f32 1.0, %v574_v53 }
 0x576   :  { %v576_v56 = vmul.f32 %v1232_v52, %v575_v54 }
 0x578   :  { %v577_v60 = vadd.f32 %v1232_v52, %v576_v56 }
 0x57a   :  { %v581_v63 = vsel %vm580_vm4, %v1232_v52, %v577_v60  ;;  %v744_v60 = vld [vmem:[#allocation4 + $0x14] sm:$0xf] }
 0x57b   :  { %v586_v11 = vsel %vm583_vm5, %v585_v0, %v581_v63  ;;  %747 = vst [vmem:[#allocation1] ss:$4 sm:$0xff] %v744_v60 }
 0x582   :  { %v748_v62 = vld.sshfl [vmem:[#allocation1] sm:$0xff pattern:$0x73625140]  ;;  %v749_v63 = vld.sshfl [vmem:[#allocation1 + $0x8] sm:$0xff pattern:$0x73625140] }
 0x583   :  { %753 = vst [vmem:[#allocation1] ss:$4 sm:$0xff] %v745_v61 }
 0x58a   :  { %v754_v0 = vld.sshfl [vmem:[#allocation1] sm:$0xff pattern:$0x73625140]  ;;  %v755_v23 = vld.sshfl [vmem:[#allocation1 + $0x8] sm:$0xff pattern:$0x73625140] }
 0x58b   :  { %v759_v24 = vsel %vm1522_vm3, %v749_v63, %v755_v23 }
 0x5e5   :  { %v598_v58 = vpop.permute.xlu1 %597 }
 0x5e6   :  { %v600_v59 = vadd.f32 %v598_v58, %v594_v57 }
 0x5e8   :  { %1233 = vtanh.f32 %v600_v59  ;;  %604 = vrot.lane.b32.xlu0 %v600_v59, %s1362_s17 }
 0x5ee   :  { %v1234_v9 = vpop.eup %1233 }
 0x5ef   :  { %v602_v18 = vmul.f32 %v1234_v9, %v586_v11  ;;  %v758_v9 = vsel %vm1515_vm2, %v748_v62, %v754_v0 }
 0x5f1   :  { %609 = vrot.lane.b32.xlu2 %v602_v18, %s1362_s17 }
 0x64b   :  { %v610_v21 = vpop.permute.xlu2 %609 }
 0x64c   :  { %612 = vst.msk [vmem:[#allocation2] sm:$0x3] %vm44_vm0, %v610_v21 }
 0x64d   :  { %614 = vst.msk [vmem:[#allocation9 + $0x6] sm:$0x3] %vm219_vm12, %v610_v21 }
 0x64e   :  { %616 = vst.msk [vmem:[#allocation9 + $0x8] sm:$0x3] %vm222_vm13, %v610_v21 }
 0x653   :  { %v633_v25 = vld [vmem:[#allocation2] sm:$0x3] }
 0x654   :  { %1161 = vmatmul.msk.f32.vlgmr.msra.gmra.mxu0 %vm110_vm1, %v633_v25  ;;  %1162 = vmatmul.msk.f32.vlgmr.msra.gmra.mxu1 %vm110_vm1, %v633_v25 }
 0x65a   :  { %v605_v27 = vpop.permute.xlu0 %604 }
 0x65b   :  { %607 = vst.msk [vmem:[#allocation3] sm:$0x3] %vm44_vm0, %v605_v27 }
 0x662   :  { %v718_v28 = vld [vmem:[#allocation3] sm:$0x3] }
 0x663   :  { %720 = vrot.lane.b32.xlu1 %v718_v28, %s1362_s17 }
 0x6d1   :  { %v654_v31 = vpop.f32.mrf.mxu0  ;;  %v674_v2 = vpop.f32.mrf.mxu1 }
 0x6d2   :  { %v677_v32 = vadd.f32 %v654_v31, %v631_v30  ;;  %v678_v4 = vadd.f32 %v674_v2, %v632_v1 }
 0x6d4   :  { %v1163_v33 = vmul.f32 -1.442695, %v677_v32  ;;  %v1164_v20 = vmul.f32 -1.442695, %v678_v4 }
 0x6d5   :  { %v721_v43 = vpop.permute.xlu1 %720 }
 0x6d6   :  { %1235 = vpow2.f32 %v1163_v33 }
 0x6dc   :  { %v1236_v34 = vpop.eup %1235 }
 0x6dd   :  { %v685_v35 = vadd.f32 1.0, %v1236_v34 }
 0x6df   :  { %1237 = vrcp.f32 %v685_v35  ;;  %v698_v7 = vand.u32 2147483648, %v685_v35  ;;  %v696_v10 = vand.u32 2147483647, %v685_v35  ;;  %vm692_vm7 = vweird.f32 %v685_v35 }
 0x6e0   :  { %1239 = vtanh.f32 %v678_v4 }
 0x6e1   :  { %v699_v13 = vor.u32 1.1754944e-38, %v698_v7  ;;  %vm697_vm9 = vcmp.eq.f32.partialorder %v696_v10, 8.507059e+37  ;;  %1241 = vpow2.f32 %v1164_v20 }
 0x6e5   :  { %v1238_v3 = vpop.eup %1237 }
 0x6e6   :  { %v688_v5 = vmul.f32 %v1238_v3, %v685_v35  ;;  %vm693_vm6 = vweird.f32 %v1238_v3  ;;  %v1240_v15 = vpop.eup %1239 }
 0x6e7   :  { %vm694_vm8 = vmor %vm692_vm7, %vm693_vm6  ;;  %v1242_v38 = vpop.eup %1241 }
 0x6e8   :  { %v689_v6 = vsub.f32 1.0, %v688_v5  ;;  %v686_v39 = vadd.f32 1.0, %v1242_v38 }
 0x6ea   :  { %v690_v8 = vmul.f32 %v1238_v3, %v689_v6  ;;  %1243 = vrcp.f32 %v686_v39  ;;  %v713_v49 = vand.u32 2147483648, %v686_v39  ;;  %vm707_vm11 = vweird.f32 %v686_v39 }
 0x6eb   :  { %v711_v50 = vand.u32 2147483647, %v686_v39 }
 0x6ec   :  { %v691_v12 = vadd.f32 %v1238_v3, %v690_v8  ;;  %v714_v52 = vor.u32 1.1754944e-38, %v713_v49  ;;  %v872_v49 = vld [vmem:[#allocation4 + $0x4] sm:$0xf] }
 0x6ed   :  { %vm712_vm15 = vcmp.eq.f32.partialorder %v711_v50, 8.507059e+37 }
 0x6ee   :  { %v695_v14 = vsel %vm694_vm8, %v1238_v3, %v691_v12 }
 0x6ef   :  { %v700_v16 = vsel %vm697_vm9, %v699_v13, %v695_v14 }
 0x6f0   :  { %v724_v17 = vmul.f32 %v1240_v15, %v700_v16  ;;  %v1244_v40 = vpop.eup %1243  ;;  %v723_v45 = vmul.f32 %v721_v43, %v700_v16 }
 0x6f1   :  { %v703_v41 = vmul.f32 %v1244_v40, %v686_v39  ;;  %vm708_vm10 = vweird.f32 %v1244_v40 }
 0x6f2   :  { %726 = vrot.lane.b32.xlu2 %v724_v17, %s1362_s17  ;;  %vm709_vm14 = vmor %vm707_vm11, %vm708_vm10 }
 0x6f3   :  { %v704_v42 = vsub.f32 1.0, %v703_v41 }
 0x6f5   :  { %v705_v44 = vmul.f32 %v1244_v40, %v704_v42 }
 0x6f7   :  { %v706_v48 = vadd.f32 %v1244_v40, %v705_v44 }
 0x6f9   :  { %v710_v51 = vsel %vm709_vm14, %v1244_v40, %v706_v48  ;;  %v871_v48 = vld [vmem:[#allocation4 + $0x18] sm:$0xf] }
 0x6fa   :  { %v715_v54 = vsel %vm712_vm15, %v714_v52, %v710_v51  ;;  %874 = vst [vmem:[#allocation1] ss:$4 sm:$0xff] %v871_v48 }
 0x701   :  { %v875_v50 = vld.sshfl [vmem:[#allocation1] sm:$0xff pattern:$0x73625140]  ;;  %v876_v51 = vld.sshfl [vmem:[#allocation1 + $0x8] sm:$0xff pattern:$0x73625140] }
 0x702   :  { %880 = vst [vmem:[#allocation1] ss:$4 sm:$0xff] %v872_v49 }
 0x709   :  { %v881_v52 = vld.sshfl [vmem:[#allocation1] sm:$0xff pattern:$0x73625140] }
 0x74c   :  { %v727_v46 = vpop.permute.xlu2 %726 }
 0x74d   :  { %v729_v47 = vadd.f32 %v727_v46, %v723_v45 }
 0x74f   :  { %1245 = vtanh.f32 %v729_v47  ;;  %733 = vrot.lane.b32.xlu1 %v729_v47, %s1362_s17 }
 0x755   :  { %v1246_v53 = vpop.eup %1245 }
 0x756   :  { %v731_v55 = vmul.f32 %v1246_v53, %v715_v54  ;;  %v885_v53 = vsel %vm1515_vm2, %v875_v50, %v881_v52 }
 0x758   :  { %738 = vrot.lane.b32.xlu0 %v731_v55, %s1362_s17 }
 0x7c1   :  { %v734_v56 = vpop.permute.xlu1 %733 }
 0x7c2   :  { %736 = vst.msk [vmem:[#allocation3] sm:$0x3] %vm44_vm0, %v734_v56 }
 0x7c9   :  { %v845_v57 = vld [vmem:[#allocation3] sm:$0x3] }
 0x7ca   :  { %847 = vrot.lane.b32.xlu2 %v845_v57, %s1362_s17  ;;  %v739_v58 = vpop.permute.xlu0 %738 }
 0x7cb   :  { %741 = vst.msk [vmem:[#allocation2] sm:$0x3] %vm44_vm0, %v739_v58 }
 0x7cc   :  { %742 = vst.msk [vmem:[#allocation9 + $0x8] sm:$0x3] %vm219_vm12, %v739_v58 }
 0x7cd   :  { %743 = vst.msk [vmem:[#allocation9 + $0x6] sm:$0x3] %vm222_vm13, %v739_v58 }
 0x7d2   :  { %v760_v59 = vld [vmem:[#allocation2] sm:$0x3] }
 0x7d3   :  { %1165 = vmatmul.msk.f32.vlgmr.msra.gmra.mxu2 %vm110_vm1, %v760_v59  ;;  %1166 = vmatmul.msk.f32.vlgmr.msra.gmra.mxu3 %vm110_vm1, %v760_v59  ;;  %v882_v59 = vld.sshfl [vmem:[#allocation1 + $0x8] sm:$0xff pattern:$0x73625140] }
 0x7d4   :  { %v886_v60 = vsel %vm1522_vm3, %v876_v51, %v882_v59 }
 0x824   :  { %v848_v12 = vpop.permute.xlu2 %847 }
 0x856   :  { %v781_v11 = vpop.f32.mrf.mxu2  ;;  %v801_v25 = vpop.f32.mrf.mxu3 }
 0x857   :  { %v804_v18 = vadd.f32 %v781_v11, %v758_v9  ;;  %v805_v28 = vadd.f32 %v801_v25, %v759_v24 }
 0x859   :  { %v1167_v19 = vmul.f32 -1.442695, %v804_v18  ;;  %v1168_v4 = vmul.f32 -1.442695, %v805_v28 }
 0x85b   :  { %1247 = vpow2.f32 %v1167_v19 }
 0x861   :  { %v1248_v21 = vpop.eup %1247 }
 0x862   :  { %v812_v22 = vadd.f32 1.0, %v1248_v21 }
 0x864   :  { %1249 = vrcp.f32 %v812_v22  ;;  %v825_v31 = vand.u32 2147483648, %v812_v22  ;;  %v823_v33 = vand.u32 2147483647, %v812_v22  ;;  %vm819_vm5 = vweird.f32 %v812_v22 }
 0x865   :  { %1251 = vtanh.f32 %v805_v28 }
 0x866   :  { %v826_v35 = vor.u32 1.1754944e-38, %v825_v31  ;;  %vm824_vm7 = vcmp.eq.f32.partialorder %v823_v33, 8.507059e+37  ;;  %1253 = vpow2.f32 %v1168_v4 }
 0x86a   :  { %v1250_v27 = vpop.eup %1249 }
 0x86b   :  { %v815_v29 = vmul.f32 %v1250_v27, %v812_v22  ;;  %vm820_vm4 = vweird.f32 %v1250_v27  ;;  %v1252_v1 = vpop.eup %1251 }
 0x86c   :  { %vm821_vm6 = vmor %vm819_vm5, %vm820_vm4  ;;  %v1254_v5 = vpop.eup %1253 }
 0x86d   :  { %v816_v30 = vsub.f32 1.0, %v815_v29  ;;  %v813_v6 = vadd.f32 1.0, %v1254_v5 }
 0x86f   :  { %v817_v32 = vmul.f32 %v1250_v27, %v816_v30  ;;  %1255 = vrcp.f32 %v813_v6  ;;  %v840_v20 = vand.u32 2147483648, %v813_v6  ;;  %vm834_vm9 = vweird.f32 %v813_v6 }
 0x870   :  { %v838_v38 = vand.u32 2147483647, %v813_v6 }
 0x871   :  { %v818_v34 = vadd.f32 %v1250_v27, %v817_v32  ;;  %v841_v40 = vor.u32 1.1754944e-38, %v840_v20  ;;  %v999_v20 = vld [vmem:[#allocation4] sm:$0xf] }
 0x872   :  { %vm839_vm11 = vcmp.eq.f32.partialorder %v838_v38, 8.507059e+37 }
 0x873   :  { %v822_v37 = vsel %vm821_vm6, %v1250_v27, %v818_v34 }
 0x874   :  { %v827_v2 = vsel %vm824_vm7, %v826_v35, %v822_v37 }
 0x875   :  { %v851_v3 = vmul.f32 %v1252_v1, %v827_v2  ;;  %v1256_v7 = vpop.eup %1255  ;;  %v850_v14 = vmul.f32 %v848_v12, %v827_v2 }
 0x876   :  { %v830_v8 = vmul.f32 %v1256_v7, %v813_v6  ;;  %vm835_vm8 = vweird.f32 %v1256_v7 }
 0x877   :  { %853 = vrot.lane.b32.xlu0 %v851_v3, %s1362_s17  ;;  %vm836_vm10 = vmor %vm834_vm9, %vm835_vm8 }
 0x878   :  { %v831_v10 = vsub.f32 1.0, %v830_v8 }
 0x87a   :  { %v832_v13 = vmul.f32 %v1256_v7, %v831_v10 }
 0x87c   :  { %v833_v17 = vadd.f32 %v1256_v7, %v832_v13 }
 0x87e   :  { %v837_v39 = vsel %vm836_vm10, %v1256_v7, %v833_v17  ;;  %v998_v17 = vld [vmem:[#allocation4 + $0x1c] sm:$0xf] }
 0x87f   :  { %v842_v42 = vsel %vm839_vm11, %v841_v40, %v837_v39  ;;  %1001 = vst [vmem:[#allocation1] ss:$4 sm:$0xff] %v998_v17 }
 0x886   :  { %v1002_v38 = vld.sshfl [vmem:[#allocation1] sm:$0xff pattern:$0x73625140]  ;;  %v1003_v39 = vld.sshfl [vmem:[#allocation1 + $0x8] sm:$0xff pattern:$0x73625140] }
 0x887   :  { %1007 = vst [vmem:[#allocation1] ss:$4 sm:$0xff] %v999_v20 }
 0x88e   :  { %v1008_v40 = vld.sshfl [vmem:[#allocation1] sm:$0xff pattern:$0x73625140] }
 0x8e9   :  { %v854_v15 = vpop.permute.xlu0 %853 }
 0x8ea   :  { %v856_v16 = vadd.f32 %v854_v15, %v850_v14 }
 0x8ec   :  { %1257 = vtanh.f32 %v856_v16  ;;  %860 = vrot.lane.b32.xlu2 %v856_v16, %s1362_s17 }
 0x8f2   :  { %v1258_v41 = vpop.eup %1257 }
 0x8f3   :  { %v858_v43 = vmul.f32 %v1258_v41, %v842_v42  ;;  %v1012_v41 = vsel %vm1515_vm2, %v1002_v38, %v1008_v40 }
 0x8f5   :  { %865 = vrot.lane.b32.xlu1 %v858_v43, %s1362_s17 }
 0x946   :  { %v861_v44 = vpop.permute.xlu2 %860 }
 0x947   :  { %863 = vst.msk [vmem:[#allocation3] sm:$0x3] %vm44_vm0, %v861_v44 }
 0x94e   :  { %v972_v45 = vld [vmem:[#allocation3] sm:$0x3] }
 0x94f   :  { %974 = vrot.lane.b32.xlu0 %v972_v45, %s1362_s17 }
 0x967   :  { %v866_v46 = vpop.permute.xlu1 %865 }
 0x968   :  { %868 = vst.msk [vmem:[#allocation2] sm:$0x3] %vm44_vm0, %v866_v46 }
 0x969   :  { %869 = vst.msk [vmem:[#allocation9 + $0xa] sm:$0x3] %vm219_vm12, %v866_v46 }
 0x96a   :  { %870 = vst.msk [vmem:[#allocation9 + $0x4] sm:$0x3] %vm222_vm13, %v866_v46 }
 0x96f   :  { %v887_v47 = vld [vmem:[#allocation2] sm:$0x3] }
 0x970   :  { %1169 = vmatmul.msk.f32.vlgmr.msrb.gmra.mxu0 %vm110_vm1, %v887_v47  ;;  %1170 = vmatmul.msk.f32.vlgmr.msrb.gmra.mxu1 %vm110_vm1, %v887_v47  ;;  %v1009_v47 = vld.sshfl [vmem:[#allocation1 + $0x8] sm:$0xff pattern:$0x73625140] }
 0x971   :  { %v1013_v48 = vsel %vm1522_vm3, %v1003_v39, %v1009_v47 }
 0x9c1   :  { %v975_v34 = vpop.permute.xlu0 %974 }
 0x9ed   :  { %v908_v54 = vpop.f32.mrf.mxu0  ;;  %v928_v61 = vpop.f32.mrf.mxu1 }
 0x9ee   :  { %v931_v55 = vadd.f32 %v908_v54, %v885_v53  ;;  %v932_v63 = vadd.f32 %v928_v61, %v886_v60 }
 0x9f0   :  { %v1171_v56 = vmul.f32 -1.442695, %v931_v55  ;;  %v1172_v28 = vmul.f32 -1.442695, %v932_v63 }
 0x9f2   :  { %1259 = vpow2.f32 %v1171_v56 }
 0x9f8   :  { %v1260_v57 = vpop.eup %1259 }
 0x9f9   :  { %v939_v58 = vadd.f32 1.0, %v1260_v57 }
 0x9fb   :  { %1261 = vrcp.f32 %v939_v58  ;;  %v952_v11 = vand.u32 2147483648, %v939_v58  ;;  %v950_v19 = vand.u32 2147483647, %v939_v58  ;;  %vm946_vm15 = vweird.f32 %v939_v58 }
 0x9fc   :  { %1263 = vtanh.f32 %v932_v63 }
 0x9fd   :  { %v953_v22 = vor.u32 1.1754944e-38, %v952_v11  ;;  %vm951_vm5 = vcmp.eq.f32.partialorder %v950_v19, 8.507059e+37  ;;  %1265 = vpow2.f32 %v1172_v28 }
 0xa01   :  { %v1262_v62 = vpop.eup %1261 }
 0xa02   :  { %v942_v0 = vmul.f32 %v1262_v62, %v939_v58  ;;  %vm947_vm14 = vweird.f32 %v1262_v62  ;;  %v1264_v24 = vpop.eup %1263 }
 0xa03   :  { %vm948_vm4 = vmor %vm946_vm15, %vm947_vm14  ;;  %v1266_v29 = vpop.eup %1265 }
 0xa04   :  { %v943_v9 = vsub.f32 1.0, %v942_v0  ;;  %v940_v30 = vadd.f32 1.0, %v1266_v29 }
 0xa06   :  { %v944_v18 = vmul.f32 %v1262_v62, %v943_v9  ;;  %1267 = vrcp.f32 %v940_v30  ;;  %v967_v4 = vand.u32 2147483648, %v940_v30  ;;  %vm961_vm7 = vweird.f32 %v940_v30 }
 0xa07   :  { %v965_v5 = vand.u32 2147483647, %v940_v30 }
 0xa08   :  { %v945_v21 = vadd.f32 %v1262_v62, %v944_v18  ;;  %v968_v7 = vor.u32 1.1754944e-38, %v967_v4 }
 0xa09   :  { %vm966_vm9 = vcmp.eq.f32.partialorder %v965_v5, 8.507059e+37 }
 0xa0a   :  { %v949_v23 = vsel %vm948_vm4, %v1262_v62, %v945_v21 }
 0xa0b   :  { %v954_v25 = vsel %vm951_vm5, %v953_v22, %v949_v23 }
 0xa0c   :  { %v978_v27 = vmul.f32 %v1264_v24, %v954_v25  ;;  %v1268_v31 = vpop.eup %1267  ;;  %v977_v37 = vmul.f32 %v975_v34, %v954_v25 }
 0xa0d   :  { %v957_v32 = vmul.f32 %v1268_v31, %v940_v30  ;;  %vm962_vm6 = vweird.f32 %v1268_v31 }
 0xa0e   :  { %980 = vrot.lane.b32.xlu1 %v978_v27, %s1362_s17  ;;  %vm963_vm8 = vmor %vm961_vm7, %vm962_vm6 }
 0xa0f   :  { %v958_v33 = vsub.f32 1.0, %v957_v32 }
 0xa11   :  { %v959_v35 = vmul.f32 %v1268_v31, %v958_v33 }
 0xa13   :  { %v960_v3 = vadd.f32 %v1268_v31, %v959_v35 }
 0xa15   :  { %v964_v6 = vsel %vm963_vm8, %v1268_v31, %v960_v3 }
 0xa16   :  { %v969_v10 = vsel %vm966_vm9, %v968_v7, %v964_v6 }
 0xa80   :  { %v981_v1 = vpop.permute.xlu1 %980 }
 0xa81   :  { %v983_v2 = vadd.f32 %v981_v1, %v977_v37 }
 0xa83   :  { %1269 = vtanh.f32 %v983_v2  ;;  %987 = vrot.lane.b32.xlu0 %v983_v2, %s1362_s17 }
 0xa89   :  { %v1270_v8 = vpop.eup %1269 }
 0xa8a   :  { %v985_v12 = vmul.f32 %v1270_v8, %v969_v10 }
 0xa8c   :  { %992 = vrot.lane.b32.xlu2 %v985_v12, %s1362_s17 }
 0xae6   :  { %v993_v13 = vpop.permute.xlu2 %992 }
 0xae7   :  { %995 = vst.msk [vmem:[#allocation2] sm:$0x3] %vm44_vm0, %v993_v13 }
 0xae8   :  { %996 = vst.msk [vmem:[#allocation9 + $0xc] sm:$0x3] %vm219_vm12, %v993_v13 }
 0xae9   :  { %997 = vst.msk [vmem:[#allocation9 + $0x2] sm:$0x3] %vm222_vm13, %v993_v13 }
 0xaee   :  { %v1014_v14 = vld [vmem:[#allocation2] sm:$0x3] }
 0xaef   :  { %1173 = vmatmul.msk.f32.vlgmr.msrb.gmra.mxu2 %vm110_vm1, %v1014_v14  ;;  %1174 = vmatmul.msk.f32.vlgmr.msrb.gmra.mxu3 %vm110_vm1, %v1014_v14 }
 0xaf5   :  { %v988_v15 = vpop.permute.xlu0 %987 }
 0xaf6   :  { %990 = vst.msk [vmem:[#allocation3] sm:$0x3] %vm44_vm0, %v988_v15 }
 0xafd   :  { %v1099_v16 = vld [vmem:[#allocation3] sm:$0x3] }
 0xafe   :  { %1101 = vrot.lane.b32.xlu1 %v1099_v16, %s1362_s17 }
 0xb70   :  { %v1102_v18 = vpop.permute.xlu1 %1101 }
 0xb72   :  { %v1035_v42 = vpop.f32.mrf.mxu2  ;;  %v1055_v49 = vpop.f32.mrf.mxu3 }
 0xb73   :  { %v1058_v43 = vadd.f32 %v1035_v42, %v1012_v41  ;;  %v1059_v51 = vadd.f32 %v1055_v49, %v1013_v48 }
 0xb75   :  { %v1175_v44 = vmul.f32 -1.442695, %v1058_v43  ;;  %v1176_v61 = vmul.f32 -1.442695, %v1059_v51 }
 0xb77   :  { %1271 = vpow2.f32 %v1175_v44 }
 0xb7d   :  { %v1272_v45 = vpop.eup %1271 }
 0xb7e   :  { %v1066_v46 = vadd.f32 1.0, %v1272_v45 }
 0xb80   :  { %1273 = vrcp.f32 %v1066_v46  ;;  %v1079_v54 = vand.u32 2147483648, %v1066_v46  ;;  %v1077_v55 = vand.u32 2147483647, %v1066_v46  ;;  %vm1073_vm2 = vweird.f32 %v1066_v46 }
 0xb81   :  { %1275 = vtanh.f32 %v1059_v51 }
 0xb82   :  { %v1080_v57 = vor.u32 1.1754944e-38, %v1079_v54  ;;  %vm1078_vm11 = vcmp.eq.f32.partialorder %v1077_v55, 8.507059e+37  ;;  %1277 = vpow2.f32 %v1176_v61 }
 0xb86   :  { %v1274_v50 = vpop.eup %1273 }
 0xb87   :  { %v1069_v52 = vmul.f32 %v1274_v50, %v1066_v46  ;;  %vm1074_vm1 = vweird.f32 %v1274_v50  ;;  %v1276_v59 = vpop.eup %1275 }
 0xb88   :  { %vm1075_vm10 = vmor %vm1073_vm2, %vm1074_vm1  ;;  %v1278_v62 = vpop.eup %1277 }
 0xb89   :  { %v1070_v53 = vsub.f32 1.0, %v1069_v52  ;;  %v1067_v63 = vadd.f32 1.0, %v1278_v62 }
 0xb8b   :  { %v1071_v26 = vmul.f32 %v1274_v50, %v1070_v53  ;;  %1279 = vrcp.f32 %v1067_v63  ;;  %v1094_v25 = vand.u32 2147483648, %v1067_v63  ;;  %vm1088_vm14 = vweird.f32 %v1067_v63 }
 0xb8c   :  { %v1092_v27 = vand.u32 2147483647, %v1067_v63 }
 0xb8d   :  { %v1072_v56 = vadd.f32 %v1274_v50, %v1071_v26  ;;  %v1095_v29 = vor.u32 1.1754944e-38, %v1094_v25 }
 0xb8e   :  { %vm1093_vm4 = vcmp.eq.f32.partialorder %v1092_v27, 8.507059e+37 }
 0xb8f   :  { %v1076_v58 = vsel %vm1075_vm10, %v1274_v50, %v1072_v56 }
 0xb90   :  { %v1081_v60 = vsel %vm1078_vm11, %v1080_v57, %v1076_v58 }
 0xb91   :  { %v1105_v36 = vmul.f32 %v1276_v59, %v1081_v60  ;;  %v1280_v0 = vpop.eup %1279  ;;  %v1104_v21 = vmul.f32 %v1102_v18, %v1081_v60 }
 0xb92   :  { %v1084_v9 = vmul.f32 %v1280_v0, %v1067_v63  ;;  %vm1089_vm3 = vweird.f32 %v1280_v0 }
 0xb93   :  { %1107 = vrot.lane.b32.xlu2 %v1105_v36, %s1362_s17  ;;  %vm1090_vm15 = vmor %vm1088_vm14, %vm1089_vm3 }
 0xb94   :  { %v1085_v11 = vsub.f32 1.0, %v1084_v9 }
 0xb96   :  { %v1086_v19 = vmul.f32 %v1280_v0, %v1085_v11 }
 0xb98   :  { %v1087_v24 = vadd.f32 %v1280_v0, %v1086_v19 }
 0xb9a   :  { %v1091_v28 = vsel %vm1090_vm15, %v1280_v0, %v1087_v24 }
 0xb9b   :  { %v1096_v31 = vsel %vm1093_vm4, %v1095_v29, %v1091_v28 }
 0xbed   :  { %v1108_v22 = vpop.permute.xlu2 %1107 }
 0xbee   :  { %v1110_v23 = vadd.f32 %v1108_v22, %v1104_v21 }
 0xbf0   :  { %1281 = vtanh.f32 %v1110_v23  ;;  %1114 = vrot.lane.b32.xlu1 %v1110_v23, %s1362_s17 }
 0xbf6   :  { %v1282_v30 = vpop.eup %1281 }
 0xbf7   :  { %v1112_v32 = vmul.f32 %v1282_v30, %v1096_v31 }
 0xbf9   :  { %1119 = vrot.lane.b32.xlu0 %v1112_v32, %s1362_s17 }
 0xc62   :  { %v1115_v33 = vpop.permute.xlu1 %1114 }
 0xc63   :  { %1117 = vst.msk [vmem:[#allocation3] sm:$0x3] %vm44_vm0, %v1115_v33 }
 0xc6b   :  { %v1120_v34 = vpop.permute.xlu0 %1119 }
 0xc6c   :  { %1122 = vst.msk [vmem:[#allocation2] sm:$0x3] %vm44_vm0, %v1120_v34 }
 0xc6d   :  { %1123 = vst.msk [vmem:[#allocation9 + $0xe] sm:$0x3] %vm219_vm12, %v1120_v34 }
 0xc6e   :  { %1124 = vst.msk [vmem:[#allocation9] sm:$0x3] %vm222_vm13, %v1120_v34 }
 0xc6f   :  { %1137 = dma.vmem_to_hbm [thread:$0]  %s1130_s1, 256, %s1132_s25, [#allocation6], %s1369_s26, %s1369_s26, %s1370_s27  }
 0xc70   :  { %1359 = dma.done.wait [#allocation6], 256  }
 0xc71   :  { %1360 = vsyncadd [#allocation6], 4294967040 }
 0xc72   :  { %1142 = vsyncpa [#allocation5], 1 }
 0xc73   :  { %1143 = vsyncpa [#allocation8], 1 }
 0xc74   :  { %1144 = vsyncpa [#allocation6], 1 }

</bundles_post_ra>
